<compile_context>
chip_gen: v7x
topology: tpu7x:2x2x1
jax: 0.10.0
libtpu: 0.0.40
codegen_flags: <defaults>
</compile_context>

<pallas_src>
import functools

import numpy as np
import jax
import jax.numpy as jnp
from jax.experimental import pallas as pl
from jax.experimental.pallas import tpu as pltpu


def _round_up(a, b):
    return ((a + b - 1) // b) * b


def _cdiv(a, b):
    return (a + b - 1) // b


# --------------------------------------------------------------------------
# Static (construction-time) index machinery — faithful port of the PyTorch
# helpers, with a seeded NumPy RandomState standing in for the module-level
# np.random permutation "keys" so the example is deterministic.
# --------------------------------------------------------------------------
class Permutar:
    def __init__(self, image_size, block_size, rng):
        self.block_size = block_size
        self.image_size = image_size
        self.blocks_row = image_size // block_size
        self.key = np.argsort(rng.rand(self.blocks_row ** 2))

    def get_start_block(self, block):
        n_row = block // self.blocks_row
        n_col = block % self.blocks_row
        return np.array([n_row * self.block_size, n_col * self.block_size])

    def desordenar(self, pic):  # pic: numpy (N, C, H, W)
        image = pic.copy()
        for place, replace in enumerate(self.key):
            s = self.get_start_block(place)
            r = self.get_start_block(replace)
            image[:, :, s[0]:s[0] + self.block_size, s[1]:s[1] + self.block_size] = \
                pic[:, :, r[0]:r[0] + self.block_size, r[1]:r[1] + self.block_size]
        return image


def calculate_index_pool(dims, stride, padding, kernel_size):
    output_dims = (dims + 2 * padding - (kernel_size - 1) - 1) // stride + 1
    center = np.zeros((output_dims, output_dims, 2), dtype=int)
    r = np.arange(-padding + kernel_size // 2 - 1,
                  dims + padding - kernel_size // 2, stride)
    center[:, :, 0] = r[:, None]
    center[:, :, 1] = r[None, :]
    return center


def get_index_pool(index, size):
    return [[index[0] + i, index[1] + j] for i in range(size) for j in range(size)]


def retrieve_original_pixels(positions, perm):
    pixel_positions = np.array([perm.get_start_block(xi) for xi in perm.key])
    pix_pos = []
    for pos in positions:
        index = np.where((pixel_positions == pos).all(axis=1))[0]
        fake_pos = perm.get_start_block(index)
        pix_pos.append(fake_pos.squeeze())
    return pix_pos


def build_deform_maxpool_tables(dim, perm, kernel_size, stride=None, padding=0,
                                disorder=True, rng=None):
    """Precompute the flat gather indices and the one-hot select matrix."""
    # TODO(synk): padding > 0 is broken in the original index math (negative /
    # out-of-range taps); only padding == 0 is supported here.
    assert padding == 0, "only padding=0 is supported"
    if stride is None:
        stride = kernel_size
    od = (dim + 2 * padding - (kernel_size - 1) - 1) // stride + 1
    new_perm = Permutar(od, 1, rng)

    idx = calculate_index_pool(dim, stride, padding, kernel_size)
    idx = np.transpose(idx, (2, 0, 1))                     # (2, od, od)
    idx_ = new_perm.desordenar(idx[None])[0] if disorder else idx

    kk = kernel_size * kernel_size
    od2 = od * od
    flat_idx = np.zeros((od2, kk), dtype=np.int32)
    for i in range(od):
        for j in range(od):
            positions = get_index_pool(idx_[:, i, j], kernel_size)
            org = retrieve_original_pixels(positions, perm)
            for t, coord in enumerate(org):
                flat_idx[i * od + j, t] = int(coord[0]) * dim + int(coord[1])
    assert flat_idx.min() >= 0 and flat_idx.max() < dim * dim

    # Lane packing: pack g channels per row so the kernel's output last dim is
    # exactly lane dense (multiple of 128) whenever possible.
    if od2 >= 128:
        g, out_w = 1, _round_up(od2, 128)
    elif 128 % od2 == 0:
        g, out_w = 128 // od2, 128
    else:
        g, out_w = 1, 128

    hw = dim * dim
    row_w = _round_up(g * hw, 128)

    # One-hot (0/1) select matrix, tap-major columns, resident in VMEM:
    #   sel[c*hw + flat_idx[p, t], t*out_w + c*od2 + p] = 1
    sel = np.zeros((row_w, kk * out_w), dtype=np.float32)
    p = np.arange(od2)
    for c in range(g):
        for t in range(kk):
            sel[c * hw + flat_idx[:, t], t * out_w + c * od2 + p] = 1.0
    # TODO(synk): for large H*W the resident one-hot matrix no longer fits in
    # VMEM; that regime needs an in-kernel / manual-DMA gather path instead.
    assert sel.size * 2 <= (8 << 20), "sel too large for the fused MXU-gather path"
    return dict(od=od, kk=kk, od2=od2, g=g, out_w=out_w, hw=hw, row_w=row_w,
                flat_idx=flat_idx, sel=sel)


# --------------------------------------------------------------------------
# Pallas kernel: fused MXU one-hot gather + KK-way VPU max, one HBM pass.
# --------------------------------------------------------------------------
def _exact_bf16_chunks(x):
    """Split f32 -> (hi, mid, lo) bf16 with x == hi + mid + lo bit-exactly.

    Each round-to-nearest residual has <= 8 significant bits, so every chunk is
    exactly representable in bf16 and the f32 re-accumulation reconstructs x.
    """
    hi = x.astype(jnp.bfloat16)
    r1 = x - hi.astype(jnp.float32)
    mid = r1.astype(jnp.bfloat16)
    lo = (r1 - mid.astype(jnp.float32)).astype(jnp.bfloat16)
    return hi, mid, lo


def _deform_maxpool_kernel(x_ref, sel_ref, o_ref, *, kk, out_w):
    x = x_ref[...]
    sel = sel_ref[...]
    if x.dtype == jnp.float32:
        chunks = _exact_bf16_chunks(x)           # exact gather for f32 inputs
    elif x.dtype == jnp.bfloat16:
        chunks = (x,)
    else:
        # TODO(synk): other dtypes fall back to a (possibly lossy) bf16 cast.
        chunks = (x.astype(jnp.bfloat16),)
    # MXU one-hot gather: xg[r, t*out_w + l] == x[r, gather_index(t, l)]
    xg = jnp.dot(chunks[0], sel, preferred_element_type=jnp.float32)
    for ch in chunks[1:]:
        xg = xg + jnp.dot(ch, sel, preferred_element_type=jnp.float32)
    # KK-way max over lane-aligned tap slices (VPU; kk is small & static).
    acc = xg[:, 0:out_w]
    for t in range(1, kk):
        acc = jnp.maximum(acc, xg[:, t * out_w:(t + 1) * out_w])
    o_ref[...] = acc.astype(o_ref.dtype)


def _sublane_multiple(dtype):
    isz = np.dtype(dtype).itemsize
    if isz == 1:
        return 32
    return 16   # f32 only needs 8, but the in-kernel bf16 chunks prefer 16


@functools.partial(jax.jit, static_argnames=("od", "kk", "g", "out_w"))
def deform_maxpool2d(x, sel, *, od, kk, g, out_w):
    n, c, h, w = x.shape
    hw, nc, od2 = h * w, n * c, od * od
    isz = x.dtype.itemsize
    sub = _sublane_multiple(x.dtype)
    row_w = sel.shape[0]

    # Pack g channels per row (lane-dense output); tiny pads only on x itself.
    nc_g = _round_up(nc, g)
    x_flat = x.reshape(nc, hw)
    if nc_g != nc:
        x_flat = jnp.pad(x_flat, ((0, nc_g - nc), (0, 0)))
    rows = nc_g // g
    x_rows = x_flat.reshape(rows, g * hw)
    if row_w != g * hw:  # only when g*H*W is not already a multiple of 128
        x_rows = jnp.pad(x_rows, ((0, 0), (0, row_w - g * hw)))

    # VMEM-aware row tiling: double-buffered input/output + bf16 chunk and f32
    # gather intermediates + the resident sel matrix, kept under the 16 MiB
    # scoped-VMEM default so one code path covers v5e / v6e / v7x.
    sel_bytes = sel.size * sel.dtype.itemsize
    per_row = (2 * row_w * isz          # input (double-buffered)
               + 2 * out_w * isz        # output (double-buffered)
               + 3 * row_w * 2          # bf16 split chunks
               + (kk + 1) * out_w * 4)  # f32 gather intermediate + max acc
    budget = (12 << 20) - sel_bytes
    max_rows = max(sub, (max(budget, sub * per_row) // per_row) // sub * sub)

    rows_min = _round_up(max(rows, sub), sub)
    num_steps = max(1, _cdiv(rows_min, max_rows))
    if num_steps == 1 and rows_min >= 4 * sub:
        num_steps = 2           # let the parallel axis span both v7x cores
    tile_rows = _round_up(_cdiv(rows_min, num_steps), sub)
    rows_pad = tile_rows * num_steps
    if rows_pad != rows:
        x_rows = jnp.pad(x_rows, ((0, rows_pad - rows), (0, 0)))

    out = pl.pallas_call(
        functools.partial(_deform_maxpool_kernel, kk=kk, out_w=out_w),
        out_shape=jax.ShapeDtypeStruct((rows_pad, out_w), x.dtype),
        grid=(num_steps,),
        in_specs=[
            pl.BlockSpec((tile_rows, row_w), lambda i: (i, 0)),
            pl.BlockSpec((row_w, kk * out_w), lambda i: (0, 0)),  # resident sel
        ],
        out_specs=pl.BlockSpec((tile_rows, out_w), lambda i: (i, 0)),
        compiler_params=pltpu.CompilerParams(
            dimension_semantics=("parallel",)),
    )(x_rows, sel)

    out = out[:rows, :g * od2].reshape(rows * g, od2)[:nc]
    return out.reshape(n, c, od, od)


# --------------------------------------------------------------------------
if __name__ == "__main__":
    # Module config consistent with the PyTorch DeformMaxPool2d:
    #   dim=16, kernel_size=2, stride=2, padding=0, disorder=True,
    #   perm = Permutar(16, 1)  (pixel-level permutation of the input image).
    N, C, DIM = 2, 4, 16
    KERNEL, STRIDE, PADDING = 2, 2, 0

    rng = np.random.RandomState(0)        # deterministic permutation keys
    perm = Permutar(DIM, 1, rng)
    tbl = build_deform_maxpool_tables(DIM, perm, KERNEL, stride=STRIDE,
                                      padding=PADDING, disorder=True, rng=rng)

    key = jax.random.PRNGKey(0)
    x = jax.random.normal(key, (N, C, DIM, DIM), dtype=jnp.float32)
    sel = jnp.asarray(tbl["sel"], dtype=jnp.bfloat16)    # 0/1 -> exact in bf16

    out = deform_maxpool2d(x, sel, od=tbl["od"], kk=tbl["kk"],
                           g=tbl["g"], out_w=tbl["out_w"])
    out = jax.block_until_ready(out)

    # NumPy reference (gather + amax).  The kernel is designed to be bit-exact
    # for f32 inputs; tolerance left at 1e-6 only as an ulp-level safety margin.
    od, kk = tbl["od"], tbl["kk"]
    x_np = np.asarray(x).reshape(N * C, DIM * DIM)
    gathered = x_np[:, tbl["flat_idx"].reshape(-1)].reshape(N * C, od * od, kk)
    ref = gathered.max(-1).reshape(N, C, od, od)
    np.testing.assert_allclose(np.asarray(out), ref, rtol=1e-6, atol=1e-6)

    print("KERNEL_OK")
</pallas_src>

<mosaic_0001>
module attributes {stable_mosaic.version = 11 : i64} {
  func.func @_deform_maxpool_kernel(%arg0: i32, %arg1: memref<16x512xf32, #tpu.memory_space<vmem>>, %arg2: memref<512x512xbf16, #tpu.memory_space<vmem>>, %arg3: memref<16x128xf32, #tpu.memory_space<vmem>>) attributes {dimension_semantics = [#tpu.dimension_semantics<parallel>], iteration_bounds = array<i64: 1>, scalar_prefetch = 0 : i64, scratch_operands = 0 : i64, tpu.core_type = #tpu.core_type<tc>, window_params = [{transform_indices = @transform_0, window_bounds = array<i64: 16, 512>}, {pipeline_mode = #tpu.pipeline_mode<synchronous>, transform_indices = @transform_1, window_bounds = array<i64: 512, 512>}, {transform_indices = @transform_2, window_bounds = array<i64: 16, 128>}]} {
    %c0 = arith.constant 0 : index
    %c0_0 = arith.constant 0 : index
    %0 = vector.load %arg1[%c0, %c0_0] : memref<16x512xf32, #tpu.memory_space<vmem>>, vector<16x512xf32>
    %c0_1 = arith.constant 0 : index
    %c0_2 = arith.constant 0 : index
    %1 = vector.load %arg2[%c0_1, %c0_2] : memref<512x512xbf16, #tpu.memory_space<vmem>>, vector<512x512xbf16>
    %2 = arith.truncf %0 : vector<16x512xf32> to vector<16x512xbf16>
    %3 = arith.extf %2 : vector<16x512xbf16> to vector<16x512xf32>
    %4 = arith.subf %0, %3 : vector<16x512xf32>
    %5 = arith.truncf %4 : vector<16x512xf32> to vector<16x512xbf16>
    %6 = arith.extf %5 : vector<16x512xbf16> to vector<16x512xf32>
    %7 = arith.subf %4, %6 : vector<16x512xf32>
    %8 = arith.truncf %7 : vector<16x512xf32> to vector<16x512xbf16>
    %cst = arith.constant dense<0.000000e+00> : vector<16x512xf32>
    %9 = tpu.matmul %2, %1, %cst {dimension_numbers = #tpu.dot_dimension_numbers<[1], [0], [0], [1], [0, 0, 1, 1], [], []>} : vector<16x512xbf16>, vector<512x512xbf16>, vector<16x512xf32> -> vector<16x512xf32>
    %cst_3 = arith.constant dense<0.000000e+00> : vector<16x512xf32>
    %10 = tpu.matmul %5, %1, %cst_3 {dimension_numbers = #tpu.dot_dimension_numbers<[1], [0], [0], [1], [0, 0, 1, 1], [], []>} : vector<16x512xbf16>, vector<512x512xbf16>, vector<16x512xf32> -> vector<16x512xf32>
    %11 = arith.addf %9, %10 : vector<16x512xf32>
    %cst_4 = arith.constant dense<0.000000e+00> : vector<16x512xf32>
    %12 = tpu.matmul %8, %1, %cst_4 {dimension_numbers = #tpu.dot_dimension_numbers<[1], [0], [0], [1], [0, 0, 1, 1], [], []>} : vector<16x512xbf16>, vector<512x512xbf16>, vector<16x512xf32> -> vector<16x512xf32>
    %13 = arith.addf %11, %12 : vector<16x512xf32>
    %14 = vector.extract_strided_slice %13 {offsets = [0, 0], sizes = [16, 128], strides = [1, 1]} : vector<16x512xf32> to vector<16x128xf32>
    %15 = vector.extract_strided_slice %13 {offsets = [0, 128], sizes = [16, 128], strides = [1, 1]} : vector<16x512xf32> to vector<16x128xf32>
    %16 = arith.maximumf %14, %15 : vector<16x128xf32>
    %17 = vector.extract_strided_slice %13 {offsets = [0, 256], sizes = [16, 128], strides = [1, 1]} : vector<16x512xf32> to vector<16x128xf32>
    %18 = arith.maximumf %16, %17 : vector<16x128xf32>
    %19 = vector.extract_strided_slice %13 {offsets = [0, 384], sizes = [16, 128], strides = [1, 1]} : vector<16x512xf32> to vector<16x128xf32>
    %20 = arith.maximumf %18, %19 : vector<16x128xf32>
    %c0_5 = arith.constant 0 : index
    %c0_6 = arith.constant 0 : index
    %21 = vector.load %arg3[%c0_5, %c0_6] : memref<16x128xf32, #tpu.memory_space<vmem>>, vector<16x128xf32>
    tpu.vector_store %arg3[%c0_5, %c0_6], %20 {strides = array<i32>} : memref<16x128xf32, #tpu.memory_space<vmem>>, vector<16x128xf32>,
    return
  }
  func.func @transform_0(%arg0: i32) -> (i32, i32) {
    %c0_i32 = arith.constant 0 : i32
    %c0_i32_0 = arith.constant 0 : i32
    return %arg0, %c0_i32 : i32, i32
  }
  func.func @transform_1(%arg0: i32) -> (i32, i32) {
    %c0_i32 = arith.constant 0 : i32
    %c0_i32_0 = arith.constant 0 : i32
    %c0_i32_1 = arith.constant 0 : i32
    return %c0_i32, %c0_i32_0 : i32, i32
  }
  func.func @transform_2(%arg0: i32) -> (i32, i32) {
    %c0_i32 = arith.constant 0 : i32
    %c0_i32_0 = arith.constant 0 : i32
    return %arg0, %c0_i32 : i32, i32
  }
}

</mosaic_0001>

<bundles_post_ra>
// kernel: deform_maxpool2d.1
= control target key start
LH: loop header
LB: loop body
LE: loop exit
PB: predicated region body
PF: predicated region fallthrough
CT: control target
= control target key end

     0   :  { %7 = vsyncpa [#allocation3], 0  ;;  %s1795_s9 = smov [#allocation2]   ;;  %s2549_s0 = inlined_call_operand.vmem [shape: f32[16,512], index: 0, kind: input, shape index: {}]   ;;  %s2550_s1 = inlined_call_operand.hbm [shape: bf16[512,512], index: 1, kind: input, shape index: {}]   ;;  %s2551_s2 = inlined_call_operand.vmem [shape: f32[16,128], index: 2, kind: output, shape index: {}]  }
   0x1   :  { %s15_s10 = sshll.u32 %s1795_s9, 4  ;;  %s1771_s13 = scalar_lea.hbm %s2550_s1, 16384  ;;  %s16_s10 = int_to_ptr.vmem [resolvable:$true] %s15_s10 }
   0x2   :  { %p1772_p0 = scmp.ne.s32.totalorder %s2550_s1, %s1771_s13  ;;  %p1775_p1 = scmp.lt.u32.totalorder %s1771_s13, %s2550_s1 }
   0x4   :  { %p1777_p2 = pnand %p1775_p1, %p1772_p0 }
   0x6   :  { %1780 = shalt.err (!%p1777_p2)
}
   0x7   :  { %s1781_s18 = scalar_lea.vmem %s16_s10, 16384  ;;  %p1786_p4 = scmp.lt.s32.totalorder %s16_s10, %s16_s10 }
   0x8   :  { %p1782_p3 = scmp.ne.s32.totalorder %s16_s10, %s1781_s18  ;;  %p1787_p5 = scmp.lt.s32.totalorder %s1781_s18, %s1781_s18 }
   0xa   :  { %p1788_p6 = por %p1787_p5, %p1786_p4 }
   0xc   :  { %p1789_p7 = pnand %p1788_p6, %p1782_p3 }
   0xe   :  { %1792 = shalt.err (!%p1789_p7)
}
   0xf   :  { %s1796_s19 = smov 256   ;;  %s1797_s20 = smov 16  }
  0x10   :  { %21 = dma.hbm_to_vmem [thread:$0]  %s2550_s1, 16384, %s16_s10, [#allocation3], %s1796_s19, %s1796_s19, %s1797_s20  }
  0x11   :  { %1793 = dma.done.wait [#allocation3], 16384  }
  0x12   :  { %1794 = vsyncadd [#allocation3], 4294950912  ;;  %v1825_v0 = vld [vmem:[#allocation2 + $0x4] ss:$16 sps:$4 sm:$0xff]   ;;  %v1827_v1 = vld [vmem:[#allocation2 + $0xc] ss:$16 sps:$4 sm:$0xff]  }
  0x13   :  { %845 = vmatprep.subr.bf16.mxu0 %v1825_v0  ;;  %v1830_v2 = vld [vmem:[#allocation2] ss:$16 sps:$4 sm:$0xff]   ;;  %v1832_v3 = vld [vmem:[#allocation2 + $0x8] ss:$16 sps:$4 sm:$0xff]   ;;  %931 = vmatprep.subr.bf16.mxu1 %v1827_v1  ;;  %v1835_v4 = vld [vmem:[#allocation2 + $0x24] ss:$16 sps:$4 sm:$0xff]  }
  0x14   :  { %846 = vmatpush1.bf16.msra.mxu0 %v1830_v2  ;;  %932 = vmatpush1.bf16.msra.mxu1 %v1832_v3  ;;  %v1839_v5 = vld [vmem:[#allocation2 + $0x2c] ss:$16 sps:$4 sm:$0xff]   ;;  %v1841_v6 = vld [vmem:[#allocation2 + $0x20] ss:$16 sps:$4 sm:$0xff]   ;;  %v1844_v7 = vld [vmem:[#allocation2 + $0x28] ss:$16 sps:$4 sm:$0xff]  }
  0x15   :  { %847 = vmatprep.subr.bf16.mxu0 %v1835_v4  ;;  %933 = vmatprep.subr.bf16.mxu1 %v1839_v5  ;;  %v1847_v8 = vld [vmem:[#allocation2 + $0x44] ss:$16 sps:$4 sm:$0xff]   ;;  %v1849_v9 = vld [vmem:[#allocation2 + $0x4c] ss:$16 sps:$4 sm:$0xff]   ;;  %v1851_v10 = vld [vmem:[#allocation2 + $0x40] ss:$16 sps:$4 sm:$0xff]  }
  0x16   :  { %v1853_v11 = vld [vmem:[#allocation2 + $0x48] ss:$16 sps:$4 sm:$0xff]   ;;  %v1857_v12 = vld [vmem:[#allocation2 + $0x64] ss:$16 sps:$4 sm:$0xff]   ;;  %v1861_v13 = vld [vmem:[#allocation2 + $0x6c] ss:$16 sps:$4 sm:$0xff]  }
  0x17   :  { %v1863_v14 = vld [vmem:[#allocation2 + $0x60] ss:$16 sps:$4 sm:$0xff]   ;;  %v1867_v15 = vld [vmem:[#allocation2 + $0x68] ss:$16 sps:$4 sm:$0xff]   ;;  %v1869_v16 = vld [vmem:[#allocation2 + $0x84] ss:$16 sps:$4 sm:$0xff]  }
  0x18   :  { %848 = vmatpush1.bf16.msra.mxu0 %v1841_v6  ;;  %934 = vmatpush1.bf16.msra.mxu1 %v1844_v7  ;;  %v1873_v17 = vld [vmem:[#allocation2 + $0x8c] ss:$16 sps:$4 sm:$0xff]   ;;  %v1875_v18 = vld [vmem:[#allocation2 + $0x80] ss:$16 sps:$4 sm:$0xff]   ;;  %v1877_v19 = vld [vmem:[#allocation2 + $0x88] ss:$16 sps:$4 sm:$0xff]  }
  0x19   :  { %849 = vmatprep.subr.bf16.mxu0 %v1847_v8  ;;  %935 = vmatprep.subr.bf16.mxu1 %v1849_v9  ;;  %v1881_v20 = vld [vmem:[#allocation2 + $0xa4] ss:$16 sps:$4 sm:$0xff]   ;;  %v1885_v21 = vld [vmem:[#allocation2 + $0xac] ss:$16 sps:$4 sm:$0xff]   ;;  %v1887_v22 = vld [vmem:[#allocation2 + $0xa0] ss:$16 sps:$4 sm:$0xff]  }
  0x1a   :  { %v1891_v23 = vld [vmem:[#allocation2 + $0xa8] ss:$16 sps:$4 sm:$0xff]   ;;  %v1893_v24 = vld [vmem:[#allocation2 + $0xc4] ss:$16 sps:$4 sm:$0xff]   ;;  %v1897_v25 = vld [vmem:[#allocation2 + $0xcc] ss:$16 sps:$4 sm:$0xff]  }
  0x1b   :  { %v1899_v26 = vld [vmem:[#allocation2 + $0xc0] ss:$16 sps:$4 sm:$0xff]   ;;  %v1901_v27 = vld [vmem:[#allocation2 + $0xc8] ss:$16 sps:$4 sm:$0xff]   ;;  %v1905_v28 = vld [vmem:[#allocation2 + $0xe4] ss:$16 sps:$4 sm:$0xff]  }
  0x1c   :  { %850 = vmatpush1.bf16.msra.mxu0 %v1851_v10  ;;  %936 = vmatpush1.bf16.msra.mxu1 %v1853_v11  ;;  %v1909_v29 = vld [vmem:[#allocation2 + $0xec] ss:$16 sps:$4 sm:$0xff]   ;;  %v1911_v30 = vld [vmem:[#allocation2 + $0xe0] ss:$16 sps:$4 sm:$0xff]   ;;  %v1915_v31 = vld [vmem:[#allocation2 + $0xe8] ss:$16 sps:$4 sm:$0xff]  }
  0x1d   :  { %851 = vmatprep.subr.bf16.mxu0 %v1857_v12  ;;  %937 = vmatprep.subr.bf16.mxu1 %v1861_v13  ;;  %v1917_v32 = vld [vmem:[#allocation2 + $0x104] ss:$16 sps:$4 sm:$0xff]   ;;  %v1921_v33 = vld [vmem:[#allocation2 + $0x10c] ss:$16 sps:$4 sm:$0xff]   ;;  %v1923_v34 = vld [vmem:[#allocation2 + $0x100] ss:$16 sps:$4 sm:$0xff]  }
  0x1e   :  { %v1925_v35 = vld [vmem:[#allocation2 + $0x108] ss:$16 sps:$4 sm:$0xff]   ;;  %v1929_v36 = vld [vmem:[#allocation2 + $0x124] ss:$16 sps:$4 sm:$0xff]   ;;  %v1933_v37 = vld [vmem:[#allocation2 + $0x12c] ss:$16 sps:$4 sm:$0xff]  }
  0x1f   :  { %v1935_v38 = vld [vmem:[#allocation2 + $0x120] ss:$16 sps:$4 sm:$0xff]   ;;  %v1939_v39 = vld [vmem:[#allocation2 + $0x128] ss:$16 sps:$4 sm:$0xff]   ;;  %v1941_v40 = vld [vmem:[#allocation2 + $0x144] ss:$16 sps:$4 sm:$0xff]  }
  0x20   :  { %852 = vmatpush1.bf16.msra.mxu0 %v1863_v14  ;;  %938 = vmatpush1.bf16.msra.mxu1 %v1867_v15  ;;  %v1945_v41 = vld [vmem:[#allocation2 + $0x14c] ss:$16 sps:$4 sm:$0xff]   ;;  %v1947_v42 = vld [vmem:[#allocation2 + $0x140] ss:$16 sps:$4 sm:$0xff]   ;;  %v1949_v43 = vld [vmem:[#allocation2 + $0x148] ss:$16 sps:$4 sm:$0xff]  }
  0x21   :  { %853 = vmatprep.subr.bf16.mxu0 %v1869_v16  ;;  %939 = vmatprep.subr.bf16.mxu1 %v1873_v17  ;;  %v1953_v44 = vld [vmem:[#allocation2 + $0x164] ss:$16 sps:$4 sm:$0xff]   ;;  %v1957_v45 = vld [vmem:[#allocation2 + $0x16c] ss:$16 sps:$4 sm:$0xff]   ;;  %v1967_v48 = vld [vmem:[#allocation2 + $0x160] ss:$16 sps:$4 sm:$0xff]  }
  0x22   :  { %v26_v46 = vld [vmem:[%s2549_s0 + $0x8] sm:$0xff]  ;;  %2723 = vst [vmem:[#allocation5_spill] sm:$0xff] %v1967_v48  ;;  %v1975_v51 = vld [vmem:[#allocation2 + $0x184] ss:$16 sps:$4 sm:$0xff]   ;;  %v1979_v53 = vld [vmem:[#allocation2 + $0x180] ss:$16 sps:$4 sm:$0xff]  }
  0x23   :  { %v30_v47 = vld [vmem:[%s2549_s0 + $0x28] sm:$0xff]  ;;  %2725 = vst [vmem:[#allocation7_spill] sm:$0xff] %v1975_v51  ;;  %2727 = vst [vmem:[#allocation9_spill] sm:$0xff] %v1979_v53  ;;  %v1985_v57 = vld [vmem:[#allocation2 + $0x1a4] ss:$16 sps:$4 sm:$0xff]  }
  0x24   :  { %854 = vmatpush1.bf16.msra.mxu0 %v1875_v18  ;;  %940 = vmatpush1.bf16.msra.mxu1 %v1877_v19  ;;  %v1969_v49 = vld [vmem:[#allocation2 + $0x168] ss:$16 sps:$4 sm:$0xff]   ;;  %v1971_v50 = vpack.c.bf16 %v30_v47, %v26_v46  ;;  %v1977_v52 = vld [vmem:[#allocation2 + $0x18c] ss:$16 sps:$4 sm:$0xff]   ;;  %2729 = vst [vmem:[#allocation11_spill] sm:$0xff] %v1985_v57  ;;  %v25_v58 = vld [vmem:[%s2549_s0] sm:$0xff] }
  0x25   :  { %855 = vmatprep.subr.bf16.mxu0 %v1881_v20  ;;  %941 = vmatprep.subr.bf16.mxu1 %v1885_v21  ;;  %2724 = vst [vmem:[#allocation6_spill] sm:$0xff] %v1969_v49  ;;  %2726 = vst [vmem:[#allocation8_spill] sm:$0xff] %v1977_v52  ;;  %v1981_v54 = vld [vmem:[#allocation2 + $0x188] ss:$16 sps:$4 sm:$0xff]   ;;  %v29_v61 = vld [vmem:[%s2549_s0 + $0x20] sm:$0xff] }
  0x26   :  { %2728 = vst [vmem:[#allocation10_spill] sm:$0xff] %v1981_v54  ;;  %v166_v55 = vunpack.c.l.bf16 %v1971_v50  ;;  %v170_v56 = vunpack.c.h.bf16 %v1971_v50  ;;  %v2001_v62 = vld [vmem:[#allocation2 + $0x1ac] ss:$16 sps:$4 sm:$0xff]  }
  0x27   :  { %2732 = vst [vmem:[#allocation14_spill] sm:$0xff] %v2001_v62 }
  0x28   :  { %856 = vmatpush1.bf16.msra.mxu0 %v1887_v22  ;;  %942 = vmatpush1.bf16.msra.mxu1 %v1891_v23  ;;  %v1992_v59 = vsub.f32 %v26_v46, %v166_v55  ;;  %v1994_v60 = vsub.f32 %v30_v47, %v170_v56  ;;  %v2009_v46 = vld [vmem:[#allocation2 + $0x1a8] ss:$16 sps:$4 sm:$0xff]   ;;  %v2011_v47 = vpack.c.bf16 %v29_v61, %v25_v58  ;;  %v2015_v55 = vld [vmem:[#allocation2 + $0x1c4] ss:$16 sps:$4 sm:$0xff]   ;;  %v2019_v56 = vld [vmem:[#allocation2 + $0x1cc] ss:$16 sps:$4 sm:$0xff]  }
  0x29   :  { %857 = vmatprep.subr.bf16.mxu0 %v1893_v24  ;;  %943 = vmatprep.subr.bf16.mxu1 %v1897_v25  ;;  %2734 = vst [vmem:[#allocation16_spill] sm:$0xff] %v2009_v46  ;;  %2736 = vst [vmem:[#allocation18_spill] sm:$0xff] %v2015_v55 }
  0x2a   :  { %2730 = vst [vmem:[#allocation12_spill] sm:$0xff] %v1992_v59  ;;  %2731 = vst [vmem:[#allocation13_spill] sm:$0xff] %v1994_v60  ;;  %v2005_v63 = vpack.c.bf16 %v1994_v60, %v1992_v59  ;;  %v2023_v60 = vld [vmem:[#allocation2 + $0x1c0] ss:$16 sps:$4 sm:$0xff]   ;;  %v2025_v59 = vld [vmem:[#allocation2 + $0x1c8] ss:$16 sps:$4 sm:$0xff]  }
  0x2b   :  { %2735 = vst [vmem:[#allocation17_spill] sm:$0xff] %v2011_v47  ;;  %2737 = vst [vmem:[#allocation19_spill] sm:$0xff] %v2019_v56 }
  0x2c   :  { %858 = vmatpush1.bf16.msra.mxu0 %v1899_v26  ;;  %944 = vmatpush1.bf16.msra.mxu1 %v1901_v27  ;;  %2733 = vst [vmem:[#allocation15_spill] sm:$0xff] %v2005_v63  ;;  %2738 = vst [vmem:[#allocation20_spill] sm:$0xff] %v2025_v59 }
  0x2d   :  { %859 = vmatprep.subr.bf16.mxu0 %v1905_v28  ;;  %945 = vmatprep.subr.bf16.mxu1 %v1909_v29 }
  0x2e   :  { %877 = vmatprep.mubr.bf16.mxu0 %v2005_v63  ;;  %963 = vmatprep.mubr.bf16.mxu1 %v2005_v63  ;;  %v2037_v63 = vld [vmem:[#allocation2 + $0x1e0] ss:$16 sps:$4 sm:$0xff]  }
  0x2f   :  { %2741 = vst [vmem:[#allocation23_spill] sm:$0xff] %v2037_v63 }
  0x30   :  { %860 = vmatpush1.bf16.msra.mxu0 %v1911_v30  ;;  %946 = vmatpush1.bf16.msra.mxu1 %v1915_v31 }
  0x31   :  { %861 = vmatprep.subr.bf16.mxu0 %v1917_v32  ;;  %947 = vmatprep.subr.bf16.mxu1 %v1921_v33 }
  0x34   :  { %862 = vmatpush1.bf16.msra.mxu0 %v1923_v34  ;;  %948 = vmatpush1.bf16.msra.mxu1 %v1925_v35 }
  0x35   :  { %863 = vmatprep.subr.bf16.mxu0 %v1929_v36  ;;  %949 = vmatprep.subr.bf16.mxu1 %v1933_v37 }
  0x38   :  { %864 = vmatpush1.bf16.msra.mxu0 %v1935_v38  ;;  %950 = vmatpush1.bf16.msra.mxu1 %v1939_v39 }
  0x39   :  { %865 = vmatprep.subr.bf16.mxu0 %v1941_v40  ;;  %951 = vmatprep.subr.bf16.mxu1 %v1945_v41 }
  0x3c   :  { %866 = vmatpush1.bf16.msra.mxu0 %v1947_v42  ;;  %952 = vmatpush1.bf16.msra.mxu1 %v1949_v43 }
  0x3d   :  { %867 = vmatprep.subr.bf16.mxu0 %v1953_v44  ;;  %953 = vmatprep.subr.bf16.mxu1 %v1957_v45 }
  0x40   :  { %868 = vmatpush1.bf16.msra.mxu0 %v1967_v48  ;;  %954 = vmatpush1.bf16.msra.mxu1 %v1969_v49  ;;  %v2007_v48 = vld [vmem:[#allocation2 + $0x1a0] ss:$16 sps:$4 sm:$0xff]  }
  0x41   :  { %869 = vmatprep.subr.bf16.mxu0 %v1975_v51  ;;  %955 = vmatprep.subr.bf16.mxu1 %v1977_v52  ;;  %v2039_v52 = vld [vmem:[#allocation2 + $0x1e8] ss:$16 sps:$4 sm:$0xff]  }
  0x42   :  { %2742 = vst [vmem:[#allocation24_spill] sm:$0xff] %v2039_v52 }
  0x44   :  { %870 = vmatpush1.bf16.msra.mxu0 %v1979_v53  ;;  %956 = vmatpush1.bf16.msra.mxu1 %v1981_v54  ;;  %v165_v53 = vunpack.c.l.bf16 %v2011_v47  ;;  %v169_v54 = vunpack.c.h.bf16 %v2011_v47  ;;  %v2047_v47 = vld [vmem:[#allocation2 + $0x204] ss:$16 sps:$4 sm:$0xff]  }
  0x45   :  { %871 = vmatprep.subr.bf16.mxu0 %v1985_v57  ;;  %957 = vmatprep.subr.bf16.mxu1 %v2001_v62  ;;  %v2031_v57 = vld [vmem:[#allocation2 + $0x1e4] ss:$16 sps:$4 sm:$0xff]   ;;  %v2035_v62 = vld [vmem:[#allocation2 + $0x1ec] ss:$16 sps:$4 sm:$0xff]   ;;  %2745 = vst [vmem:[#allocation27_spill] sm:$0xff] %v2047_v47 }
  0x46   :  { %2739 = vst [vmem:[#allocation21_spill] sm:$0xff] %v2031_v57  ;;  %2740 = vst [vmem:[#allocation22_spill] sm:$0xff] %v2035_v62  ;;  %v2041_v51 = vsub.f32 %v25_v58, %v165_v53  ;;  %v2043_v49 = vsub.f32 %v29_v61, %v169_v54  ;;  %v2063_v54 = vld [vmem:[#allocation2 + $0x224] ss:$16 sps:$4 sm:$0xff]   ;;  %v2067_v58 = vld [vmem:[#allocation2 + $0x22c] ss:$16 sps:$4 sm:$0xff]  }
  0x47   :  { %2750 = vst [vmem:[#allocation32_spill] sm:$0xff] %v2063_v54  ;;  %2751 = vst [vmem:[#allocation33_spill] sm:$0xff] %v2067_v58  ;;  %v2071_v61 = vld [vmem:[#allocation2 + $0x220] ss:$16 sps:$4 sm:$0xff]  }
  0x48   :  { %872 = vmatpush1.bf16.msra.mxu0 %v2007_v48  ;;  %958 = vmatpush1.bf16.msra.mxu1 %v2009_v46  ;;  %2743 = vst [vmem:[#allocation25_spill] sm:$0xff] %v2041_v51  ;;  %2744 = vst [vmem:[#allocation26_spill] sm:$0xff] %v2043_v49  ;;  %v2055_v46 = vld [vmem:[#allocation2 + $0x208] ss:$16 sps:$4 sm:$0xff]   ;;  %v2059_v53 = vpack.c.bf16 %v2043_v49, %v2041_v51  ;;  %v2077_v51 = vld [vmem:[#allocation2 + $0x244] ss:$16 sps:$4 sm:$0xff]  }
  0x49   :  { %873 = vmatprep.subr.bf16.mxu0 %v2015_v55  ;;  %959 = vmatprep.subr.bf16.mxu1 %v2019_v56  ;;  %v2051_v56 = vld [vmem:[#allocation2 + $0x20c] ss:$16 sps:$4 sm:$0xff]   ;;  %v2053_v55 = vld [vmem:[#allocation2 + $0x200] ss:$16 sps:$4 sm:$0xff]   ;;  %2748 = vst [vmem:[#allocation30_spill] sm:$0xff] %v2055_v46  ;;  %2752 = vst [vmem:[#allocation34_spill] sm:$0xff] %v2071_v61 }
  0x4a   :  { %2746 = vst [vmem:[#allocation28_spill] sm:$0xff] %v2051_v56  ;;  %2747 = vst [vmem:[#allocation29_spill] sm:$0xff] %v2053_v55  ;;  %v2073_v49 = vld [vmem:[#allocation2 + $0x228] ss:$16 sps:$4 sm:$0xff]  }
  0x4b   :  { %2749 = vst [vmem:[#allocation31_spill] sm:$0xff] %v2059_v53  ;;  %2753 = vst [vmem:[#allocation35_spill] sm:$0xff] %v2073_v49 }
  0x4c   :  { %874 = vmatpush1.bf16.msra.mxu0 %v2023_v60  ;;  %960 = vmatpush1.bf16.msra.mxu1 %v2025_v59  ;;  %2754 = vst [vmem:[#allocation36_spill] sm:$0xff] %v2077_v51  ;;  %v2167_v59 = vld [vmem:[#allocation2 + $0x30c] ss:$16 sps:$4 sm:$0xff]  }
  0x4d   :  { %875 = vmatprep.subr.bf16.mxu0 %v2031_v57  ;;  %961 = vmatprep.subr.bf16.mxu1 %v2035_v62  ;;  %v2157_v62 = vld [vmem:[#allocation2 + $0x2e8] ss:$16 sps:$4 sm:$0xff]   ;;  %2782 = vst [vmem:[#allocation64_spill] sm:$0xff] %v2167_v59 }
  0x4e   :  { %2778 = vst [vmem:[#allocation60_spill] sm:$0xff] %v2157_v62 }
  0x50   :  { %876 = vmatpush1.bf16.msra.mxu0 %v2037_v63  ;;  %962 = vmatpush1.bf16.msra.mxu1 %v2039_v52  ;;  %v2085_v52 = vld [vmem:[#allocation2 + $0x248] ss:$16 sps:$4 sm:$0xff]  }
  0x51   :  { %888 = vmatprep.subr.bf16.mxu0 %v2047_v47  ;;  %974 = vmatprep.subr.bf16.mxu1 %v2051_v56  ;;  %v2081_v56 = vld [vmem:[#allocation2 + $0x24c] ss:$16 sps:$4 sm:$0xff]   ;;  %v2083_v47 = vld [vmem:[#allocation2 + $0x240] ss:$16 sps:$4 sm:$0xff]   ;;  %2757 = vst [vmem:[#allocation39_spill] sm:$0xff] %v2085_v52 }
  0x52   :  { %2755 = vst [vmem:[#allocation37_spill] sm:$0xff] %v2081_v56  ;;  %2756 = vst [vmem:[#allocation38_spill] sm:$0xff] %v2083_v47 }
  0x53   :  { %878 = vmatmul.mubr.bf16.vlgmr.msra.gmra.mrb[0].mxu0 %v2059_v53  ;;  %964 = vmatmul.mubr.bf16.vlgmr.msra.gmra.mrb[0].mxu1 %v2059_v53  ;;  %v2089_v53 = vld [vmem:[#allocation2 + $0x264] ss:$16 sps:$4 sm:$0xff]  }
  0x54   :  { %889 = vmatpush1.bf16.msra.mxu0 %v2053_v55  ;;  %975 = vmatpush1.bf16.msra.mxu1 %v2055_v46  ;;  %2758 = vst [vmem:[#allocation40_spill] sm:$0xff] %v2089_v53  ;;  %v2093_v46 = vld [vmem:[#allocation2 + $0x26c] ss:$16 sps:$4 sm:$0xff]   ;;  %v2101_v55 = vld [vmem:[#allocation2 + $0x284] ss:$16 sps:$4 sm:$0xff]  }
  0x55   :  { %890 = vmatprep.subr.bf16.mxu0 %v2063_v54  ;;  %976 = vmatprep.subr.bf16.mxu1 %v2067_v58  ;;  %2759 = vst [vmem:[#allocation41_spill] sm:$0xff] %v2093_v46  ;;  %v2095_v54 = vld [vmem:[#allocation2 + $0x260] ss:$16 sps:$4 sm:$0xff]   ;;  %v2097_v58 = vld [vmem:[#allocation2 + $0x268] ss:$16 sps:$4 sm:$0xff]   ;;  %2762 = vst [vmem:[#allocation44_spill] sm:$0xff] %v2101_v55 }
  0x56   :  { %2760 = vst [vmem:[#allocation42_spill] sm:$0xff] %v2095_v54  ;;  %2761 = vst [vmem:[#allocation43_spill] sm:$0xff] %v2097_v58 }
  0x58   :  { %891 = vmatpush1.bf16.msra.mxu0 %v2071_v61  ;;  %977 = vmatpush1.bf16.msra.mxu1 %v2073_v49  ;;  %v2105_v49 = vld [vmem:[#allocation2 + $0x28c] ss:$16 sps:$4 sm:$0xff]   ;;  %v2113_v61 = vld [vmem:[#allocation2 + $0x2a4] ss:$16 sps:$4 sm:$0xff]  }
  0x59   :  { %892 = vmatprep.subr.bf16.mxu0 %v2077_v51  ;;  %978 = vmatprep.subr.bf16.mxu1 %v2081_v56  ;;  %2763 = vst [vmem:[#allocation45_spill] sm:$0xff] %v2105_v49  ;;  %v2107_v51 = vld [vmem:[#allocation2 + $0x280] ss:$16 sps:$4 sm:$0xff]   ;;  %v2109_v56 = vld [vmem:[#allocation2 + $0x288] ss:$16 sps:$4 sm:$0xff]   ;;  %2766 = vst [vmem:[#allocation48_spill] sm:$0xff] %v2113_v61 }
  0x5a   :  { %2764 = vst [vmem:[#allocation46_spill] sm:$0xff] %v2107_v51  ;;  %2765 = vst [vmem:[#allocation47_spill] sm:$0xff] %v2109_v56 }
  0x5c   :  { %893 = vmatpush1.bf16.msra.mxu0 %v2083_v47  ;;  %979 = vmatpush1.bf16.msra.mxu1 %v2085_v52  ;;  %v2117_v52 = vld [vmem:[#allocation2 + $0x2ac] ss:$16 sps:$4 sm:$0xff]   ;;  %v2125_v47 = vld [vmem:[#allocation2 + $0x2c4] ss:$16 sps:$4 sm:$0xff]  }
  0x5d   :  { %894 = vmatprep.subr.bf16.mxu0 %v2089_v53  ;;  %980 = vmatprep.subr.bf16.mxu1 %v2093_v46  ;;  %2767 = vst [vmem:[#allocation49_spill] sm:$0xff] %v2117_v52  ;;  %v2119_v53 = vld [vmem:[#allocation2 + $0x2a0] ss:$16 sps:$4 sm:$0xff]   ;;  %v2121_v46 = vld [vmem:[#allocation2 + $0x2a8] ss:$16 sps:$4 sm:$0xff]   ;;  %2770 = vst [vmem:[#allocation52_spill] sm:$0xff] %v2125_v47 }
  0x5e   :  { %2768 = vst [vmem:[#allocation50_spill] sm:$0xff] %v2119_v53  ;;  %2769 = vst [vmem:[#allocation51_spill] sm:$0xff] %v2121_v46 }
  0x60   :  { %895 = vmatpush1.bf16.msra.mxu0 %v2095_v54  ;;  %981 = vmatpush1.bf16.msra.mxu1 %v2097_v58  ;;  %v2129_v58 = vld [vmem:[#allocation2 + $0x2cc] ss:$16 sps:$4 sm:$0xff]  }
  0x61   :  { %896 = vmatprep.subr.bf16.mxu0 %v2101_v55  ;;  %982 = vmatprep.subr.bf16.mxu1 %v2105_v49  ;;  %2771 = vst [vmem:[#allocation53_spill] sm:$0xff] %v2129_v58  ;;  %v28_v49 = vld [vmem:[%s2549_s0 + $0x18] sm:$0xff] }
  0x62   :  { %v32_v55 = vld [vmem:[%s2549_s0 + $0x38] sm:$0xff] }
  0x63   :  { %v2149_v54 = vld [vmem:[#allocation2 + $0x2ec] ss:$16 sps:$4 sm:$0xff]  }
  0x64   :  { %897 = vmatpush1.bf16.msra.mxu0 %v2107_v51  ;;  %983 = vmatpush1.bf16.msra.mxu1 %v2109_v56  ;;  %v2139_v56 = vld [vmem:[#allocation2 + $0x2c0] ss:$16 sps:$4 sm:$0xff]   ;;  %v2141_v51 = vld [vmem:[#allocation2 + $0x2c8] ss:$16 sps:$4 sm:$0xff]   ;;  %2776 = vst [vmem:[#allocation58_spill] sm:$0xff] %v2149_v54 }
  0x65   :  { %898 = vmatprep.subr.bf16.mxu0 %v2113_v61  ;;  %984 = vmatprep.subr.bf16.mxu1 %v2117_v52  ;;  %2772 = vst [vmem:[#allocation54_spill] sm:$0xff] %v2139_v56  ;;  %2773 = vst [vmem:[#allocation55_spill] sm:$0xff] %v2141_v51  ;;  %v2143_v61 = vpack.c.bf16 %v32_v55, %v28_v49  ;;  %v2147_v52 = vld [vmem:[#allocation2 + $0x2e4] ss:$16 sps:$4 sm:$0xff]  }
  0x66   :  { %2775 = vst [vmem:[#allocation57_spill] sm:$0xff] %v2147_v52 }
  0x67   :  { %2774 = vst [vmem:[#allocation56_spill] sm:$0xff] %v2143_v61  ;;  %v168_v63 = vunpack.c.l.bf16 %v2143_v61 }
  0x68   :  { %899 = vmatpush1.bf16.msra.mxu0 %v2119_v53  ;;  %985 = vmatpush1.bf16.msra.mxu1 %v2121_v46  ;;  %v172_v53 = vunpack.c.h.bf16 %v2143_v61  ;;  %v2155_v46 = vld [vmem:[#allocation2 + $0x2e0] ss:$16 sps:$4 sm:$0xff]  }
  0x69   :  { %900 = vmatprep.subr.bf16.mxu0 %v2125_v47  ;;  %986 = vmatprep.subr.bf16.mxu1 %v2129_v58  ;;  %2777 = vst [vmem:[#allocation59_spill] sm:$0xff] %v2155_v46  ;;  %v2159_v57 = vsub.f32 %v28_v49, %v168_v63  ;;  %v2165_v58 = vld [vmem:[#allocation2 + $0x304] ss:$16 sps:$4 sm:$0xff]   ;;  %v2175_v49 = vld [vmem:[#allocation2 + $0x300] ss:$16 sps:$4 sm:$0xff]  }
  0x6a   :  { %v2161_v47 = vsub.f32 %v32_v55, %v172_v53  ;;  %2781 = vst [vmem:[#allocation63_spill] sm:$0xff] %v2165_v58  ;;  %2784 = vst [vmem:[#allocation66_spill] sm:$0xff] %v2175_v49  ;;  %v2177_v63 = vld [vmem:[#allocation2 + $0x308] ss:$16 sps:$4 sm:$0xff]   ;;  %v2181_v55 = vld [vmem:[#allocation2 + $0x324] ss:$16 sps:$4 sm:$0xff]  }
  0x6b   :  { %2779 = vst [vmem:[#allocation61_spill] sm:$0xff] %v2159_v57  ;;  %2785 = vst [vmem:[#allocation67_spill] sm:$0xff] %v2177_v63  ;;  %v2183_v53 = vld [vmem:[#allocation2 + $0x32c] ss:$16 sps:$4 sm:$0xff]  }
  0x6c   :  { %901 = vmatpush1.bf16.msra.mxu0 %v2139_v56  ;;  %987 = vmatpush1.bf16.msra.mxu1 %v2141_v51  ;;  %2780 = vst [vmem:[#allocation62_spill] sm:$0xff] %v2161_v47  ;;  %v2171_v56 = vpack.c.bf16 %v2161_v47, %v2159_v57  ;;  %2786 = vst [vmem:[#allocation68_spill] sm:$0xff] %v2181_v55  ;;  %v2189_v47 = vld [vmem:[#allocation2 + $0x320] ss:$16 sps:$4 sm:$0xff]   ;;  %v2191_v57 = vld [vmem:[#allocation2 + $0x328] ss:$16 sps:$4 sm:$0xff]  }
  0x6d   :  { %902 = vmatprep.subr.bf16.mxu0 %v2147_v52  ;;  %988 = vmatprep.subr.bf16.mxu1 %v2149_v54  ;;  %2787 = vst [vmem:[#allocation69_spill] sm:$0xff] %v2183_v53  ;;  %2788 = vst [vmem:[#allocation70_spill] sm:$0xff] %v2189_v47 }
  0x6e   :  { %2783 = vst [vmem:[#allocation65_spill] sm:$0xff] %v2171_v56  ;;  %920 = vmatprep.mubr.bf16.mxu0 %v2171_v56  ;;  %1006 = vmatprep.mubr.bf16.mxu1 %v2171_v56  ;;  %2789 = vst [vmem:[#allocation71_spill] sm:$0xff] %v2191_v57  ;;  %v2201_v56 = vld [vmem:[#allocation2 + $0x340] ss:$16 sps:$4 sm:$0xff]  }
  0x6f   :  { %2792 = vst [vmem:[#allocation74_spill] sm:$0xff] %v2201_v56 }
  0x70   :  { %903 = vmatpush1.bf16.msra.mxu0 %v2155_v46  ;;  %989 = vmatpush1.bf16.msra.mxu1 %v2157_v62  ;;  %v2239_v62 = vld [vmem:[#allocation2 + $0x3ac] ss:$16 sps:$4 sm:$0xff]   ;;  %v2247_v46 = vld [vmem:[#allocation2 + $0x3a8] ss:$16 sps:$4 sm:$0xff]  }
  0x71   :  { %904 = vmatprep.subr.bf16.mxu0 %v2165_v58  ;;  %990 = vmatprep.subr.bf16.mxu1 %v2167_v59  ;;  %v2195_v59 = vld [vmem:[#allocation2 + $0x344] ss:$16 sps:$4 sm:$0xff]   ;;  %v2197_v58 = vld [vmem:[#allocation2 + $0x34c] ss:$16 sps:$4 sm:$0xff]   ;;  %2803 = vst [vmem:[#allocation85_spill] sm:$0xff] %v2239_v62  ;;  %2806 = vst [vmem:[#allocation88_spill] sm:$0xff] %v2247_v46 }
  0x72   :  { %2790 = vst [vmem:[#allocation72_spill] sm:$0xff] %v2195_v59  ;;  %2791 = vst [vmem:[#allocation73_spill] sm:$0xff] %v2197_v58 }
  0x74   :  { %905 = vmatpush1.bf16.msra.mxu0 %v2175_v49  ;;  %991 = vmatpush1.bf16.msra.mxu1 %v2177_v63  ;;  %v2203_v49 = vld [vmem:[#allocation2 + $0x348] ss:$16 sps:$4 sm:$0xff]   ;;  %v2207_v63 = vld [vmem:[#allocation2 + $0x364] ss:$16 sps:$4 sm:$0xff]  }
  0x75   :  { %906 = vmatprep.subr.bf16.mxu0 %v2181_v55  ;;  %992 = vmatprep.subr.bf16.mxu1 %v2183_v53  ;;  %2793 = vst [vmem:[#allocation75_spill] sm:$0xff] %v2203_v49  ;;  %2794 = vst [vmem:[#allocation76_spill] sm:$0xff] %v2207_v63  ;;  %v2209_v55 = vld [vmem:[#allocation2 + $0x36c] ss:$16 sps:$4 sm:$0xff]   ;;  %v2213_v53 = vld [vmem:[#allocation2 + $0x360] ss:$16 sps:$4 sm:$0xff]  }
  0x76   :  { %2795 = vst [vmem:[#allocation77_spill] sm:$0xff] %v2209_v55  ;;  %2796 = vst [vmem:[#allocation78_spill] sm:$0xff] %v2213_v53 }
  0x78   :  { %907 = vmatpush1.bf16.msra.mxu0 %v2189_v47  ;;  %993 = vmatpush1.bf16.msra.mxu1 %v2191_v57  ;;  %v2215_v47 = vld [vmem:[#allocation2 + $0x368] ss:$16 sps:$4 sm:$0xff]   ;;  %v2219_v57 = vld [vmem:[#allocation2 + $0x384] ss:$16 sps:$4 sm:$0xff]  }
  0x79   :  { %908 = vmatprep.subr.bf16.mxu0 %v2195_v59  ;;  %994 = vmatprep.subr.bf16.mxu1 %v2197_v58  ;;  %2797 = vst [vmem:[#allocation79_spill] sm:$0xff] %v2215_v47  ;;  %2798 = vst [vmem:[#allocation80_spill] sm:$0xff] %v2219_v57  ;;  %v2221_v59 = vld [vmem:[#allocation2 + $0x38c] ss:$16 sps:$4 sm:$0xff]   ;;  %v2223_v58 = vld [vmem:[#allocation2 + $0x380] ss:$16 sps:$4 sm:$0xff]  }
  0x7a   :  { %2799 = vst [vmem:[#allocation81_spill] sm:$0xff] %v2221_v59  ;;  %2800 = vst [vmem:[#allocation82_spill] sm:$0xff] %v2223_v58 }
  0x7c   :  { %909 = vmatpush1.bf16.msra.mxu0 %v2201_v56  ;;  %995 = vmatpush1.bf16.msra.mxu1 %v2203_v49  ;;  %v2227_v56 = vld [vmem:[#allocation2 + $0x388] ss:$16 sps:$4 sm:$0xff]   ;;  %v27_v49 = vld [vmem:[%s2549_s0 + $0x10] sm:$0xff] }
  0x7d   :  { %910 = vmatprep.subr.bf16.mxu0 %v2207_v63  ;;  %996 = vmatprep.subr.bf16.mxu1 %v2209_v55  ;;  %2801 = vst [vmem:[#allocation83_spill] sm:$0xff] %v2227_v56  ;;  %v31_v55 = vld [vmem:[%s2549_s0 + $0x30] sm:$0xff] }
  0x7e   :  { %v2237_v63 = vld [vmem:[#allocation2 + $0x3a4] ss:$16 sps:$4 sm:$0xff]  }
  0x7f   :  { %2802 = vst [vmem:[#allocation84_spill] sm:$0xff] %v2237_v63 }
  0x80   :  { %911 = vmatpush1.bf16.msra.mxu0 %v2213_v53  ;;  %997 = vmatpush1.bf16.msra.mxu1 %v2215_v47  ;;  %v2241_v53 = vpack.c.bf16 %v31_v55, %v27_v49  ;;  %v2245_v47 = vld [vmem:[#allocation2 + $0x3a0] ss:$16 sps:$4 sm:$0xff]  }
  0x81   :  { %912 = vmatprep.subr.bf16.mxu0 %v2219_v57  ;;  %998 = vmatprep.subr.bf16.mxu1 %v2221_v59  ;;  %2805 = vst [vmem:[#allocation87_spill] sm:$0xff] %v2245_v47  ;;  %v2251_v57 = vld [vmem:[#allocation2 + $0x3c4] ss:$16 sps:$4 sm:$0xff]   ;;  %v2253_v59 = vld [vmem:[#allocation2 + $0x3cc] ss:$16 sps:$4 sm:$0xff]  }
  0x82   :  { %2804 = vst [vmem:[#allocation86_spill] sm:$0xff] %v2241_v53  ;;  %2807 = vst [vmem:[#allocation89_spill] sm:$0xff] %v2251_v57  ;;  %v167_v54 = vunpack.c.l.bf16 %v2241_v53  ;;  %v171_v52 = vunpack.c.h.bf16 %v2241_v53  ;;  %v2275_v53 = vld [vmem:[#allocation2 + $0x3e0] ss:$16 sps:$4 sm:$0xff]  }
  0x83   :  { %2808 = vst [vmem:[#allocation90_spill] sm:$0xff] %v2253_v59 }
  0x84   :  { %913 = vmatpush1.bf16.msra.mxu0 %v2223_v58  ;;  %999 = vmatpush1.bf16.msra.mxu1 %v2227_v56  ;;  %v2259_v56 = vld [vmem:[#allocation2 + $0x3c0] ss:$16 sps:$4 sm:$0xff]   ;;  %v2261_v58 = vld [vmem:[#allocation2 + $0x3c8] ss:$16 sps:$4 sm:$0xff]   ;;  %v2269_v51 = vsub.f32 %v27_v49, %v167_v54  ;;  %v2271_v61 = vsub.f32 %v31_v55, %v171_v52 }
  0x85   :  { %914 = vmatprep.subr.bf16.mxu0 %v2237_v63  ;;  %1000 = vmatprep.subr.bf16.mxu1 %v2239_v62  ;;  %2809 = vst [vmem:[#allocation91_spill] sm:$0xff] %v2259_v56  ;;  %v2265_v62 = vld [vmem:[#allocation2 + $0x3e4] ss:$16 sps:$4 sm:$0xff]   ;;  %v2267_v63 = vld [vmem:[#allocation2 + $0x3ec] ss:$16 sps:$4 sm:$0xff]  }
  0x86   :  { %2810 = vst [vmem:[#allocation92_spill] sm:$0xff] %v2265_v62  ;;  %2811 = vst [vmem:[#allocation93_spill] sm:$0xff] %v2267_v63  ;;  %v2842_v52 = vld [vmem:[#allocation37_spill] sm:$0xff]  ;;  %v2843_v54 = vld [vmem:[#allocation38_spill] sm:$0xff] }
  0x87   :  { %2812 = vst [vmem:[#allocation94_spill] sm:$0xff] %v2269_v51  ;;  %2813 = vst [vmem:[#allocation95_spill] sm:$0xff] %v2271_v61  ;;  %v2844_v49 = vld [vmem:[#allocation39_spill] sm:$0xff]  ;;  %v2845_v55 = vld [vmem:[#allocation40_spill] sm:$0xff] }
  0x88   :  { %915 = vmatpush1.bf16.msra.mxu0 %v2245_v47  ;;  %1001 = vmatpush1.bf16.msra.mxu1 %v2247_v46  ;;  %v2277_v46 = vld [vmem:[#allocation2 + $0x3e8] ss:$16 sps:$4 sm:$0xff]  }
  0x89   :  { %916 = vmatprep.subr.bf16.mxu0 %v2251_v57  ;;  %1002 = vmatprep.subr.bf16.mxu1 %v2253_v59  ;;  %v2283_v59 = vpack.c.bf16 %v2271_v61, %v2269_v51  ;;  %v2847_v61 = vld [vmem:[#allocation42_spill] sm:$0xff]  ;;  %v2848_v51 = vld [vmem:[#allocation43_spill] sm:$0xff] }
  0x8b   :  { %2814 = vst [vmem:[#allocation96_spill] sm:$0xff] %v2283_v59 }
  0x8c   :  { %917 = vmatpush1.bf16.msra.mxu0 %v2259_v56  ;;  %1003 = vmatpush1.bf16.msra.mxu1 %v2261_v58 }
  0x8d   :  { %918 = vmatprep.subr.bf16.mxu0 %v2265_v62  ;;  %1004 = vmatprep.subr.bf16.mxu1 %v2267_v63 }
  0x90   :  { %919 = vmatpush1.bf16.msra.mxu0 %v2275_v53  ;;  %1005 = vmatpush1.bf16.msra.mxu1 %v2277_v46 }
  0x91   :  { %1017 = vmatprep.subr.bf16.mxu0 %v1825_v0  ;;  %1103 = vmatprep.subr.bf16.mxu1 %v1827_v1  ;;  %v2815_v0 = vld [vmem:[#allocation5_spill] sm:$0xff]  ;;  %v2816_v1 = vld [vmem:[#allocation6_spill] sm:$0xff] }
  0x93   :  { %921 = vmatmul.mubr.bf16.vlgmr.msra.gmra.mrb[0].mxu0 %v2283_v59  ;;  %1007 = vmatmul.mubr.bf16.vlgmr.msra.gmra.mrb[0].mxu1 %v2283_v59  ;;  %v2850_v59 = vld [vmem:[#allocation45_spill] sm:$0xff] }
  0x94   :  { %1018 = vmatpush1.bf16.msra.mxu0 %v1830_v2  ;;  %1104 = vmatpush1.bf16.msra.mxu1 %v1832_v3  ;;  %v2817_v2 = vld [vmem:[#allocation7_spill] sm:$0xff]  ;;  %v2818_v3 = vld [vmem:[#allocation8_spill] sm:$0xff] }
  0x95   :  { %1019 = vmatprep.subr.bf16.mxu0 %v1835_v4  ;;  %1105 = vmatprep.subr.bf16.mxu1 %v1839_v5  ;;  %v2819_v4 = vld [vmem:[#allocation9_spill] sm:$0xff]  ;;  %v2820_v5 = vld [vmem:[#allocation10_spill] sm:$0xff] }
  0x96   :  { %1049 = vmatprep.mubr.bf16.mxu0 %v1971_v50  ;;  %1135 = vmatprep.mubr.bf16.mxu1 %v1971_v50  ;;  %v2841_v50 = vld [vmem:[#allocation36_spill] sm:$0xff] }
  0x98   :  { %1020 = vmatpush1.bf16.msra.mxu0 %v1841_v6  ;;  %1106 = vmatpush1.bf16.msra.mxu1 %v1844_v7  ;;  %v2821_v6 = vld [vmem:[#allocation11_spill] sm:$0xff]  ;;  %v2822_v7 = vld [vmem:[#allocation14_spill] sm:$0xff] }
  0x99   :  { %1021 = vmatprep.subr.bf16.mxu0 %v1847_v8  ;;  %1107 = vmatprep.subr.bf16.mxu1 %v1849_v9  ;;  %v2823_v8 = vld [vmem:[#allocation16_spill] sm:$0xff]  ;;  %v2824_v9 = vld [vmem:[#allocation18_spill] sm:$0xff] }
  0x9c   :  { %1022 = vmatpush1.bf16.msra.mxu0 %v1851_v10  ;;  %1108 = vmatpush1.bf16.msra.mxu1 %v1853_v11  ;;  %v2825_v10 = vld [vmem:[#allocation19_spill] sm:$0xff]  ;;  %v2826_v11 = vld [vmem:[#allocation20_spill] sm:$0xff] }
  0x9d   :  { %1023 = vmatprep.subr.bf16.mxu0 %v1857_v12  ;;  %1109 = vmatprep.subr.bf16.mxu1 %v1861_v13  ;;  %v2827_v12 = vld [vmem:[#allocation21_spill] sm:$0xff]  ;;  %v2828_v13 = vld [vmem:[#allocation22_spill] sm:$0xff] }
  0xa0   :  { %1024 = vmatpush1.bf16.msra.mxu0 %v1863_v14  ;;  %1110 = vmatpush1.bf16.msra.mxu1 %v1867_v15  ;;  %v2829_v14 = vld [vmem:[#allocation23_spill] sm:$0xff]  ;;  %v2830_v15 = vld [vmem:[#allocation24_spill] sm:$0xff] }
  0xa1   :  { %1025 = vmatprep.subr.bf16.mxu0 %v1869_v16  ;;  %1111 = vmatprep.subr.bf16.mxu1 %v1873_v17  ;;  %v2831_v16 = vld [vmem:[#allocation27_spill] sm:$0xff]  ;;  %v2832_v17 = vld [vmem:[#allocation28_spill] sm:$0xff] }
  0xa4   :  { %1026 = vmatpush1.bf16.msra.mxu0 %v1875_v18  ;;  %1112 = vmatpush1.bf16.msra.mxu1 %v1877_v19  ;;  %v2833_v18 = vld [vmem:[#allocation17_spill] sm:$0xff] }
  0xa5   :  { %1027 = vmatprep.subr.bf16.mxu0 %v1881_v20  ;;  %1113 = vmatprep.subr.bf16.mxu1 %v1885_v21  ;;  %v2834_v19 = vld [vmem:[#allocation29_spill] sm:$0xff]  ;;  %v2835_v20 = vld [vmem:[#allocation30_spill] sm:$0xff]  ;;  %v2836_v21 = vld [vmem:[#allocation32_spill] sm:$0xff] }
  0xa8   :  { %1028 = vmatpush1.bf16.msra.mxu0 %v1887_v22  ;;  %1114 = vmatpush1.bf16.msra.mxu1 %v1891_v23  ;;  %v2837_v22 = vld [vmem:[#allocation33_spill] sm:$0xff]  ;;  %v2838_v23 = vld [vmem:[#allocation56_spill] sm:$0xff] }
  0xa9   :  { %1029 = vmatprep.subr.bf16.mxu0 %v1893_v24  ;;  %1115 = vmatprep.subr.bf16.mxu1 %v1897_v25  ;;  %v2839_v24 = vld [vmem:[#allocation34_spill] sm:$0xff]  ;;  %v2840_v25 = vld [vmem:[#allocation35_spill] sm:$0xff] }
  0xac   :  { %1030 = vmatpush1.bf16.msra.mxu0 %v1899_v26  ;;  %1116 = vmatpush1.bf16.msra.mxu1 %v1901_v27 }
  0xad   :  { %1031 = vmatprep.subr.bf16.mxu0 %v1905_v28  ;;  %1117 = vmatprep.subr.bf16.mxu1 %v1909_v29 }
  0xb0   :  { %1032 = vmatpush1.bf16.msra.mxu0 %v1911_v30  ;;  %1118 = vmatpush1.bf16.msra.mxu1 %v1915_v31 }
  0xb1   :  { %1033 = vmatprep.subr.bf16.mxu0 %v1917_v32  ;;  %1119 = vmatprep.subr.bf16.mxu1 %v1921_v33 }
  0xb4   :  { %1034 = vmatpush1.bf16.msra.mxu0 %v1923_v34  ;;  %1120 = vmatpush1.bf16.msra.mxu1 %v1925_v35 }
  0xb5   :  { %1035 = vmatprep.subr.bf16.mxu0 %v1929_v36  ;;  %1121 = vmatprep.subr.bf16.mxu1 %v1933_v37 }
  0xb8   :  { %1036 = vmatpush1.bf16.msra.mxu0 %v1935_v38  ;;  %1122 = vmatpush1.bf16.msra.mxu1 %v1939_v39 }
  0xb9   :  { %1037 = vmatprep.subr.bf16.mxu0 %v1941_v40  ;;  %1123 = vmatprep.subr.bf16.mxu1 %v1945_v41 }
  0xbc   :  { %1038 = vmatpush1.bf16.msra.mxu0 %v1947_v42  ;;  %1124 = vmatpush1.bf16.msra.mxu1 %v1949_v43 }
  0xbd   :  { %1039 = vmatprep.subr.bf16.mxu0 %v1953_v44  ;;  %1125 = vmatprep.subr.bf16.mxu1 %v1957_v45 }
  0xc0   :  { %1040 = vmatpush1.bf16.msra.mxu0 %v2815_v0  ;;  %1126 = vmatpush1.bf16.msra.mxu1 %v2816_v1 }
  0xc1   :  { %1041 = vmatprep.subr.bf16.mxu0 %v2817_v2  ;;  %1127 = vmatprep.subr.bf16.mxu1 %v2818_v3 }
  0xc4   :  { %1042 = vmatpush1.bf16.msra.mxu0 %v2819_v4  ;;  %1128 = vmatpush1.bf16.msra.mxu1 %v2820_v5 }
  0xc5   :  { %1043 = vmatprep.subr.bf16.mxu0 %v2821_v6  ;;  %1129 = vmatprep.subr.bf16.mxu1 %v2822_v7 }
  0xc8   :  { %1044 = vmatpush1.bf16.msra.mxu0 %v2007_v48  ;;  %1130 = vmatpush1.bf16.msra.mxu1 %v2823_v8 }
  0xc9   :  { %1045 = vmatprep.subr.bf16.mxu0 %v2824_v9  ;;  %1131 = vmatprep.subr.bf16.mxu1 %v2825_v10 }
  0xcc   :  { %1046 = vmatpush1.bf16.msra.mxu0 %v2023_v60  ;;  %1132 = vmatpush1.bf16.msra.mxu1 %v2826_v11 }
  0xcd   :  { %1047 = vmatprep.subr.bf16.mxu0 %v2827_v12  ;;  %1133 = vmatprep.subr.bf16.mxu1 %v2828_v13 }
  0xd0   :  { %1048 = vmatpush1.bf16.msra.mxu0 %v2829_v14  ;;  %1134 = vmatpush1.bf16.msra.mxu1 %v2830_v15 }
  0xd1   :  { %1060 = vmatprep.subr.bf16.mxu0 %v2831_v16  ;;  %1146 = vmatprep.subr.bf16.mxu1 %v2832_v17 }
  0xd3   :  { %1050 = vmatmul.mubr.bf16.vlgmr.msra.gmra.mrb[0].mxu0 %v2833_v18  ;;  %1136 = vmatmul.mubr.bf16.vlgmr.msra.gmra.mrb[0].mxu1 %v2833_v18  ;;  %v2846_v18 = vld [vmem:[#allocation41_spill] sm:$0xff] }
  0xd4   :  { %1061 = vmatpush1.bf16.msra.mxu0 %v2834_v19  ;;  %1147 = vmatpush1.bf16.msra.mxu1 %v2835_v20 }
  0xd5   :  { %1062 = vmatprep.subr.bf16.mxu0 %v2836_v21  ;;  %1148 = vmatprep.subr.bf16.mxu1 %v2837_v22 }
  0xd6   :  { %1092 = vmatprep.mubr.bf16.mxu0 %v2838_v23  ;;  %1178 = vmatprep.mubr.bf16.mxu1 %v2838_v23  ;;  %v2849_v23 = vld [vmem:[#allocation44_spill] sm:$0xff] }
  0xd8   :  { %1063 = vmatpush1.bf16.msra.mxu0 %v2839_v24  ;;  %1149 = vmatpush1.bf16.msra.mxu1 %v2840_v25  ;;  %v2851_v25 = vld [vmem:[#allocation46_spill] sm:$0xff] }
  0xd9   :  { %1064 = vmatprep.subr.bf16.mxu0 %v2841_v50  ;;  %1150 = vmatprep.subr.bf16.mxu1 %v2842_v52  ;;  %v2852_v50 = vld [vmem:[#allocation47_spill] sm:$0xff]  ;;  %v2853_v52 = vld [vmem:[#allocation48_spill] sm:$0xff] }
  0xdc   :  { %1065 = vmatpush1.bf16.msra.mxu0 %v2843_v54  ;;  %1151 = vmatpush1.bf16.msra.mxu1 %v2844_v49  ;;  %v2854_v54 = vld [vmem:[#allocation49_spill] sm:$0xff]  ;;  %v2855_v49 = vld [vmem:[#allocation50_spill] sm:$0xff] }
  0xdd   :  { %1066 = vmatprep.subr.bf16.mxu0 %v2845_v55  ;;  %1152 = vmatprep.subr.bf16.mxu1 %v2846_v18  ;;  %v2856_v55 = vld [vmem:[#allocation51_spill] sm:$0xff]  ;;  %v2857_v18 = vld [vmem:[#allocation52_spill] sm:$0xff] }
  0xe0   :  { %1067 = vmatpush1.bf16.msra.mxu0 %v2847_v61  ;;  %1153 = vmatpush1.bf16.msra.mxu1 %v2848_v51  ;;  %v2858_v61 = vld [vmem:[#allocation53_spill] sm:$0xff]  ;;  %v2859_v51 = vld [vmem:[#allocation54_spill] sm:$0xff] }
  0xe1   :  { %1068 = vmatprep.subr.bf16.mxu0 %v2849_v23  ;;  %1154 = vmatprep.subr.bf16.mxu1 %v2850_v59  ;;  %v2860_v23 = vld [vmem:[#allocation55_spill] sm:$0xff]  ;;  %v2861_v59 = vld [vmem:[#allocation57_spill] sm:$0xff] }
  0xe4   :  { %1069 = vmatpush1.bf16.msra.mxu0 %v2851_v25  ;;  %1155 = vmatpush1.bf16.msra.mxu1 %v2852_v50  ;;  %v2862_v25 = vld [vmem:[#allocation58_spill] sm:$0xff]  ;;  %v2863_v50 = vld [vmem:[#allocation59_spill] sm:$0xff] }
  0xe5   :  { %1070 = vmatprep.subr.bf16.mxu0 %v2853_v52  ;;  %1156 = vmatprep.subr.bf16.mxu1 %v2854_v54  ;;  %v2864_v52 = vld [vmem:[#allocation60_spill] sm:$0xff]  ;;  %v2865_v54 = vld [vmem:[#allocation63_spill] sm:$0xff] }
  0xe8   :  { %1071 = vmatpush1.bf16.msra.mxu0 %v2855_v49  ;;  %1157 = vmatpush1.bf16.msra.mxu1 %v2856_v55  ;;  %v2866_v49 = vld [vmem:[#allocation64_spill] sm:$0xff]  ;;  %v2867_v55 = vld [vmem:[#allocation66_spill] sm:$0xff] }
  0xe9   :  { %1072 = vmatprep.subr.bf16.mxu0 %v2857_v18  ;;  %1158 = vmatprep.subr.bf16.mxu1 %v2858_v61  ;;  %v2868_v18 = vld [vmem:[#allocation67_spill] sm:$0xff]  ;;  %v2869_v61 = vld [vmem:[#allocation68_spill] sm:$0xff] }
  0xec   :  { %1073 = vmatpush1.bf16.msra.mxu0 %v2859_v51  ;;  %1159 = vmatpush1.bf16.msra.mxu1 %v2860_v23  ;;  %v2870_v51 = vld [vmem:[#allocation69_spill] sm:$0xff]  ;;  %v2871_v23 = vld [vmem:[#allocation70_spill] sm:$0xff] }
  0xed   :  { %1074 = vmatprep.subr.bf16.mxu0 %v2861_v59  ;;  %1160 = vmatprep.subr.bf16.mxu1 %v2862_v25  ;;  %v2872_v59 = vld [vmem:[#allocation71_spill] sm:$0xff]  ;;  %v2873_v25 = vld [vmem:[#allocation72_spill] sm:$0xff] }
  0xf0   :  { %1075 = vmatpush1.bf16.msra.mxu0 %v2863_v50  ;;  %1161 = vmatpush1.bf16.msra.mxu1 %v2864_v52  ;;  %v2874_v50 = vld [vmem:[#allocation73_spill] sm:$0xff]  ;;  %v2875_v52 = vld [vmem:[#allocation74_spill] sm:$0xff] }
  0xf1   :  { %1076 = vmatprep.subr.bf16.mxu0 %v2865_v54  ;;  %1162 = vmatprep.subr.bf16.mxu1 %v2866_v49  ;;  %v2876_v54 = vld [vmem:[#allocation75_spill] sm:$0xff]  ;;  %v2877_v49 = vld [vmem:[#allocation76_spill] sm:$0xff] }
  0xf4   :  { %1077 = vmatpush1.bf16.msra.mxu0 %v2867_v55  ;;  %1163 = vmatpush1.bf16.msra.mxu1 %v2868_v18  ;;  %v2878_v55 = vld [vmem:[#allocation77_spill] sm:$0xff]  ;;  %v2879_v18 = vld [vmem:[#allocation78_spill] sm:$0xff] }
  0xf5   :  { %1078 = vmatprep.subr.bf16.mxu0 %v2869_v61  ;;  %1164 = vmatprep.subr.bf16.mxu1 %v2870_v51  ;;  %v2880_v61 = vld [vmem:[#allocation79_spill] sm:$0xff]  ;;  %v2881_v51 = vld [vmem:[#allocation80_spill] sm:$0xff] }
  0xf8   :  { %1079 = vmatpush1.bf16.msra.mxu0 %v2871_v23  ;;  %1165 = vmatpush1.bf16.msra.mxu1 %v2872_v59  ;;  %v2882_v23 = vld [vmem:[#allocation81_spill] sm:$0xff]  ;;  %v2883_v59 = vld [vmem:[#allocation82_spill] sm:$0xff] }
  0xf9   :  { %1080 = vmatprep.subr.bf16.mxu0 %v2873_v25  ;;  %1166 = vmatprep.subr.bf16.mxu1 %v2874_v50  ;;  %v2884_v25 = vld [vmem:[#allocation83_spill] sm:$0xff]  ;;  %v2885_v50 = vld [vmem:[#allocation84_spill] sm:$0xff] }
  0xfc   :  { %1081 = vmatpush1.bf16.msra.mxu0 %v2875_v52  ;;  %1167 = vmatpush1.bf16.msra.mxu1 %v2876_v54  ;;  %v2886_v52 = vld [vmem:[#allocation85_spill] sm:$0xff] }
  0xfd   :  { %1082 = vmatprep.subr.bf16.mxu0 %v2877_v49  ;;  %1168 = vmatprep.subr.bf16.mxu1 %v2878_v55  ;;  %v2887_v49 = vld [vmem:[#allocation88_spill] sm:$0xff] }
 0x100   :  { %1083 = vmatpush1.bf16.msra.mxu0 %v2879_v18  ;;  %1169 = vmatpush1.bf16.msra.mxu1 %v2880_v61  ;;  %v2888_v18 = vld [vmem:[#allocation90_spill] sm:$0xff]  ;;  %v2889_v61 = vld [vmem:[#allocation15_spill] sm:$0xff] }
 0x101   :  { %1084 = vmatprep.subr.bf16.mxu0 %v2881_v51  ;;  %1170 = vmatprep.subr.bf16.mxu1 %v2882_v23  ;;  %v186_v51 = vunpack.c.l.bf16 %v2889_v61  ;;  %v190_v23 = vunpack.c.h.bf16 %v2889_v61 }
 0x104   :  { %1085 = vmatpush1.bf16.msra.mxu0 %v2883_v59  ;;  %1171 = vmatpush1.bf16.msra.mxu1 %v2884_v25 }
 0x105   :  { %1086 = vmatprep.subr.bf16.mxu0 %v2885_v50  ;;  %1172 = vmatprep.subr.bf16.mxu1 %v2886_v52  ;;  %v2890_v52 = vld [vmem:[#allocation12_spill] sm:$0xff]  ;;  %v2891_v50 = vld [vmem:[#allocation13_spill] sm:$0xff] }
 0x108   :  { %1087 = vmatpush1.bf16.msra.mxu0 %v2245_v47  ;;  %1173 = vmatpush1.bf16.msra.mxu1 %v2887_v49  ;;  %v194_v47 = vsub.f32 %v2890_v52, %v186_v51  ;;  %v198_v49 = vsub.f32 %v2891_v50, %v190_v23  ;;  %v1749_v51 = vld [vmem:[#allocation2 + $0x24] ss:$16 sps:$4 sm:$0xff]   ;;  %v1750_v50 = vld [vmem:[#allocation2 + $0x2c] ss:$16 sps:$4 sm:$0xff]   ;;  %v1751_v52 = vld [vmem:[#allocation2 + $0x20] ss:$16 sps:$4 sm:$0xff]  }
 0x109   :  { %1088 = vmatprep.subr.bf16.mxu0 %v2251_v57  ;;  %1174 = vmatprep.subr.bf16.mxu1 %v2888_v18  ;;  %v1745_v18 = vld [vmem:[#allocation2 + $0x4] ss:$16 sps:$4 sm:$0xff]   ;;  %v1746_v57 = vld [vmem:[#allocation2 + $0xc] ss:$16 sps:$4 sm:$0xff]   ;;  %v1759_v23 = vld [vmem:[#allocation2 + $0x60] ss:$16 sps:$4 sm:$0xff]  }
 0x10a   :  { %v202_v61 = vpack.c.bf16 %v198_v49, %v194_v47  ;;  %v1754_v47 = vld [vmem:[#allocation2 + $0x4c] ss:$16 sps:$4 sm:$0xff]   ;;  %v1755_v49 = vld [vmem:[#allocation2 + $0x40] ss:$16 sps:$4 sm:$0xff]  }
 0x10c   :  { %1089 = vmatpush1.bf16.msra.mxu0 %v2259_v56  ;;  %1175 = vmatpush1.bf16.msra.mxu1 %v2261_v58  ;;  %v2892_v56 = vld [vmem:[#allocation86_spill] sm:$0xff] }
 0x10d   :  { %1090 = vmatprep.subr.bf16.mxu0 %v2265_v62  ;;  %1176 = vmatprep.subr.bf16.mxu1 %v2267_v63  ;;  %v1747_v62 = vld [vmem:[#allocation2] ss:$16 sps:$4 sm:$0xff]   ;;  %v1748_v63 = vld [vmem:[#allocation2 + $0x8] ss:$16 sps:$4 sm:$0xff]  }
 0x110   :  { %1091 = vmatpush1.bf16.msra.mxu0 %v2275_v53  ;;  %1177 = vmatpush1.bf16.msra.mxu1 %v2277_v46 }
 0x111   :  { %1189 = vmatprep.subr.bf16.mxu0 %v1745_v18  ;;  %1275 = vmatprep.subr.bf16.mxu1 %v1746_v57  ;;  %v1752_v18 = vld [vmem:[#allocation2 + $0x28] ss:$16 sps:$4 sm:$0xff]   ;;  %v1753_v57 = vld [vmem:[#allocation2 + $0x44] ss:$16 sps:$4 sm:$0xff]  }
 0x113   :  { %1093 = vmatmul.mubr.bf16.vlgmr.msra.gmra.mrb[0].mxu0 %v2892_v56  ;;  %1179 = vmatmul.mubr.bf16.vlgmr.msra.gmra.mrb[0].mxu1 %v2892_v56  ;;  %v1756_v56 = vld [vmem:[#allocation2 + $0x48] ss:$16 sps:$4 sm:$0xff]  }
 0x114   :  { %1190 = vmatpush1.bf16.msra.mxu0 %v1747_v62  ;;  %1276 = vmatpush1.bf16.msra.mxu1 %v1748_v63  ;;  %v1757_v62 = vld [vmem:[#allocation2 + $0x64] ss:$16 sps:$4 sm:$0xff]   ;;  %v1758_v63 = vld [vmem:[#allocation2 + $0x6c] ss:$16 sps:$4 sm:$0xff]  }
 0x115   :  { %1191 = vmatprep.subr.bf16.mxu0 %v1749_v51  ;;  %1277 = vmatprep.subr.bf16.mxu1 %v1750_v50  ;;  %v1760_v51 = vld [vmem:[#allocation2 + $0x68] ss:$16 sps:$4 sm:$0xff]   ;;  %v1762_v50 = vld [vmem:[#allocation2 + $0x8c] ss:$16 sps:$4 sm:$0xff]  }
 0x116   :  { %1221 = vmatprep.mubr.bf16.mxu0 %v202_v61  ;;  %1307 = vmatprep.mubr.bf16.mxu1 %v202_v61  ;;  %v1761_v61 = vld [vmem:[#allocation2 + $0x84] ss:$16 sps:$4 sm:$0xff]  }
 0x118   :  { %1192 = vmatpush1.bf16.msra.mxu0 %v1751_v52  ;;  %1278 = vmatpush1.bf16.msra.mxu1 %v1752_v18  ;;  %v1763_v52 = vld [vmem:[#allocation2 + $0x80] ss:$16 sps:$4 sm:$0xff]   ;;  %v1764_v18 = vld [vmem:[#allocation2 + $0x88] ss:$16 sps:$4 sm:$0xff]  }
 0x119   :  { %1193 = vmatprep.subr.bf16.mxu0 %v1753_v57  ;;  %1279 = vmatprep.subr.bf16.mxu1 %v1754_v47  ;;  %v1765_v57 = vld [vmem:[#allocation2 + $0xa4] ss:$16 sps:$4 sm:$0xff]   ;;  %v1766_v47 = vld [vmem:[#allocation2 + $0xac] ss:$16 sps:$4 sm:$0xff]  }
 0x11c   :  { %1194 = vmatpush1.bf16.msra.mxu0 %v1755_v49  ;;  %1280 = vmatpush1.bf16.msra.mxu1 %v1756_v56  ;;  %v1767_v49 = vld [vmem:[#allocation2 + $0xa0] ss:$16 sps:$4 sm:$0xff]   ;;  %v1768_v56 = vld [vmem:[#allocation2 + $0xa8] ss:$16 sps:$4 sm:$0xff]  }
 0x11d   :  { %1195 = vmatprep.subr.bf16.mxu0 %v1757_v62  ;;  %1281 = vmatprep.subr.bf16.mxu1 %v1758_v63  ;;  %v1769_v62 = vld [vmem:[#allocation2 + $0xc4] ss:$16 sps:$4 sm:$0xff]   ;;  %v1770_v63 = vld [vmem:[#allocation2 + $0xcc] ss:$16 sps:$4 sm:$0xff]  }
 0x120   :  { %1196 = vmatpush1.bf16.msra.mxu0 %v1759_v23  ;;  %1282 = vmatpush1.bf16.msra.mxu1 %v1760_v51  ;;  %v2928_v23 = vld [vmem:[#allocation68_spill] sm:$0xff]  ;;  %v2929_v51 = vld [vmem:[#allocation69_spill] sm:$0xff] }
 0x121   :  { %1197 = vmatprep.subr.bf16.mxu0 %v1761_v61  ;;  %1283 = vmatprep.subr.bf16.mxu1 %v1762_v50  ;;  %v2930_v61 = vld [vmem:[#allocation70_spill] sm:$0xff]  ;;  %v2931_v50 = vld [vmem:[#allocation71_spill] sm:$0xff] }
 0x124   :  { %1198 = vmatpush1.bf16.msra.mxu0 %v1763_v52  ;;  %1284 = vmatpush1.bf16.msra.mxu1 %v1764_v18  ;;  %v2932_v52 = vld [vmem:[#allocation72_spill] sm:$0xff]  ;;  %v2933_v18 = vld [vmem:[#allocation73_spill] sm:$0xff] }
 0x125   :  { %1199 = vmatprep.subr.bf16.mxu0 %v1765_v57  ;;  %1285 = vmatprep.subr.bf16.mxu1 %v1766_v47  ;;  %v2934_v57 = vld [vmem:[#allocation74_spill] sm:$0xff]  ;;  %v2935_v47 = vld [vmem:[#allocation76_spill] sm:$0xff] }
 0x128   :  { %1200 = vmatpush1.bf16.msra.mxu0 %v1767_v49  ;;  %1286 = vmatpush1.bf16.msra.mxu1 %v1768_v56  ;;  %v2936_v49 = vld [vmem:[#allocation78_spill] sm:$0xff]  ;;  %v2937_v56 = vld [vmem:[#allocation79_spill] sm:$0xff] }
 0x129   :  { %1201 = vmatprep.subr.bf16.mxu0 %v1769_v62  ;;  %1287 = vmatprep.subr.bf16.mxu1 %v1770_v63  ;;  %v2938_v62 = vld [vmem:[#allocation80_spill] sm:$0xff]  ;;  %v2939_v63 = vld [vmem:[#allocation81_spill] sm:$0xff] }
 0x12c   :  { %1202 = vmatpush1.bf16.msra.mxu0 %v1899_v26  ;;  %1288 = vmatpush1.bf16.msra.mxu1 %v1901_v27  ;;  %v2893_v26 = vld [vmem:[#allocation31_spill] sm:$0xff] }
 0x12d   :  { %1203 = vmatprep.subr.bf16.mxu0 %v1905_v28  ;;  %1289 = vmatprep.subr.bf16.mxu1 %v1909_v29  ;;  %v185_v27 = vunpack.c.l.bf16 %v2893_v26  ;;  %v189_v28 = vunpack.c.h.bf16 %v2893_v26  ;;  %v2894_v29 = vld [vmem:[#allocation65_spill] sm:$0xff]  ;;  %v2940_v26 = vld [vmem:[#allocation84_spill] sm:$0xff] }
 0x130   :  { %1204 = vmatpush1.bf16.msra.mxu0 %v1911_v30  ;;  %1290 = vmatpush1.bf16.msra.mxu1 %v1915_v31  ;;  %v188_v30 = vunpack.c.l.bf16 %v2894_v29  ;;  %v192_v31 = vunpack.c.h.bf16 %v2894_v29  ;;  %v2943_v29 = vld [vmem:[#allocation87_spill] sm:$0xff] }
 0x131   :  { %1205 = vmatprep.subr.bf16.mxu0 %v1917_v32  ;;  %1291 = vmatprep.subr.bf16.mxu1 %v1921_v33  ;;  %v2895_v32 = vld [vmem:[#allocation25_spill] sm:$0xff] }
 0x132   :  { %v193_v33 = vsub.f32 %v2895_v32, %v185_v27  ;;  %v2941_v27 = vld [vmem:[#allocation85_spill] sm:$0xff]  ;;  %v2946_v32 = vld [vmem:[#allocation90_spill] sm:$0xff] }
 0x134   :  { %1206 = vmatpush1.bf16.msra.mxu0 %v1923_v34  ;;  %1292 = vmatpush1.bf16.msra.mxu1 %v1925_v35  ;;  %v2896_v34 = vld [vmem:[#allocation26_spill] sm:$0xff] }
 0x135   :  { %1207 = vmatprep.subr.bf16.mxu0 %v1929_v36  ;;  %1293 = vmatprep.subr.bf16.mxu1 %v1933_v37  ;;  %v197_v35 = vsub.f32 %v2896_v34, %v189_v28  ;;  %v2897_v36 = vld [vmem:[#allocation61_spill] sm:$0xff]  ;;  %v2948_v34 = vld [vmem:[#allocation95_spill] sm:$0xff] }
 0x136   :  { %v196_v37 = vsub.f32 %v2897_v36, %v188_v30  ;;  %v2944_v30 = vld [vmem:[#allocation88_spill] sm:$0xff] }
 0x137   :  { %v2950_v36 = vld [vmem:[#allocation92_spill] sm:$0xff] }
 0x138   :  { %1208 = vmatpush1.bf16.msra.mxu0 %v1935_v38  ;;  %1294 = vmatpush1.bf16.msra.mxu1 %v1939_v39  ;;  %v2898_v38 = vld [vmem:[#allocation62_spill] sm:$0xff] }
 0x139   :  { %1209 = vmatprep.subr.bf16.mxu0 %v1941_v40  ;;  %1295 = vmatprep.subr.bf16.mxu1 %v1945_v41  ;;  %v200_v39 = vsub.f32 %v2898_v38, %v192_v31  ;;  %v201_v40 = vpack.c.bf16 %v197_v35, %v193_v33  ;;  %v2945_v31 = vld [vmem:[#allocation89_spill] sm:$0xff]  ;;  %v2947_v33 = vld [vmem:[#allocation94_spill] sm:$0xff]  ;;  %v2949_v35 = vld [vmem:[#allocation91_spill] sm:$0xff] }
 0x13b   :  { %v204_v41 = vpack.c.bf16 %v200_v39, %v196_v37  ;;  %v2951_v37 = vld [vmem:[#allocation93_spill] sm:$0xff] }
 0x13c   :  { %1210 = vmatpush1.bf16.msra.mxu0 %v1947_v42  ;;  %1296 = vmatpush1.bf16.msra.mxu1 %v1949_v43  ;;  %v2899_v42 = vld [vmem:[#allocation35_spill] sm:$0xff]  ;;  %v2900_v43 = vld [vmem:[#allocation36_spill] sm:$0xff] }
 0x13d   :  { %1211 = vmatprep.subr.bf16.mxu0 %v1953_v44  ;;  %1297 = vmatprep.subr.bf16.mxu1 %v1957_v45  ;;  %v2901_v44 = vld [vmem:[#allocation37_spill] sm:$0xff]  ;;  %v2902_v45 = vld [vmem:[#allocation38_spill] sm:$0xff] }
 0x140   :  { %1212 = vmatpush1.bf16.msra.mxu0 %v2815_v0  ;;  %1298 = vmatpush1.bf16.msra.mxu1 %v2816_v1  ;;  %v2905_v0 = vld [vmem:[#allocation41_spill] sm:$0xff]  ;;  %v2906_v1 = vld [vmem:[#allocation42_spill] sm:$0xff] }
 0x141   :  { %1213 = vmatprep.subr.bf16.mxu0 %v2817_v2  ;;  %1299 = vmatprep.subr.bf16.mxu1 %v2818_v3  ;;  %v2907_v2 = vld [vmem:[#allocation43_spill] sm:$0xff]  ;;  %v2908_v3 = vld [vmem:[#allocation44_spill] sm:$0xff] }
 0x144   :  { %1214 = vmatpush1.bf16.msra.mxu0 %v2819_v4  ;;  %1300 = vmatpush1.bf16.msra.mxu1 %v2820_v5  ;;  %v2909_v4 = vld [vmem:[#allocation45_spill] sm:$0xff]  ;;  %v2910_v5 = vld [vmem:[#allocation46_spill] sm:$0xff] }
 0x145   :  { %1215 = vmatprep.subr.bf16.mxu0 %v2821_v6  ;;  %1301 = vmatprep.subr.bf16.mxu1 %v2822_v7  ;;  %v2911_v6 = vld [vmem:[#allocation47_spill] sm:$0xff]  ;;  %v2912_v7 = vld [vmem:[#allocation48_spill] sm:$0xff] }
 0x148   :  { %1216 = vmatpush1.bf16.msra.mxu0 %v2007_v48  ;;  %1302 = vmatpush1.bf16.msra.mxu1 %v2823_v8  ;;  %v2903_v48 = vld [vmem:[#allocation39_spill] sm:$0xff]  ;;  %v2913_v8 = vld [vmem:[#allocation49_spill] sm:$0xff] }
 0x149   :  { %1217 = vmatprep.subr.bf16.mxu0 %v2824_v9  ;;  %1303 = vmatprep.subr.bf16.mxu1 %v2825_v10  ;;  %v2914_v9 = vld [vmem:[#allocation50_spill] sm:$0xff]  ;;  %v2915_v10 = vld [vmem:[#allocation51_spill] sm:$0xff] }
 0x14c   :  { %1218 = vmatpush1.bf16.msra.mxu0 %v2023_v60  ;;  %1304 = vmatpush1.bf16.msra.mxu1 %v2826_v11  ;;  %v2904_v60 = vld [vmem:[#allocation40_spill] sm:$0xff] }
 0x14d   :  { %1219 = vmatprep.subr.bf16.mxu0 %v2827_v12  ;;  %1305 = vmatprep.subr.bf16.mxu1 %v2828_v13  ;;  %v2916_v11 = vld [vmem:[#allocation52_spill] sm:$0xff]  ;;  %v2917_v12 = vld [vmem:[#allocation53_spill] sm:$0xff]  ;;  %v2918_v13 = vld [vmem:[#allocation54_spill] sm:$0xff] }
 0x150   :  { %1220 = vmatpush1.bf16.msra.mxu0 %v2829_v14  ;;  %1306 = vmatpush1.bf16.msra.mxu1 %v2830_v15  ;;  %v2919_v14 = vld [vmem:[#allocation55_spill] sm:$0xff]  ;;  %v2920_v15 = vld [vmem:[#allocation57_spill] sm:$0xff] }
 0x151   :  { %1232 = vmatprep.subr.bf16.mxu0 %v2831_v16  ;;  %1318 = vmatprep.subr.bf16.mxu1 %v2832_v17  ;;  %v2921_v16 = vld [vmem:[#allocation58_spill] sm:$0xff]  ;;  %v2922_v17 = vld [vmem:[#allocation59_spill] sm:$0xff] }
 0x153   :  { %1222 = vmatmul.mubr.bf16.vlgmr.msra.gmra.mrb[0].mxu0 %v201_v40  ;;  %1308 = vmatmul.mubr.bf16.vlgmr.msra.gmra.mrb[0].mxu1 %v201_v40 }
 0x154   :  { %1233 = vmatpush1.bf16.msra.mxu0 %v2834_v19  ;;  %1319 = vmatpush1.bf16.msra.mxu1 %v2835_v20  ;;  %v2923_v19 = vld [vmem:[#allocation60_spill] sm:$0xff]  ;;  %v2924_v20 = vld [vmem:[#allocation63_spill] sm:$0xff] }
 0x155   :  { %1234 = vmatprep.subr.bf16.mxu0 %v2836_v21  ;;  %1320 = vmatprep.subr.bf16.mxu1 %v2837_v22  ;;  %v2925_v21 = vld [vmem:[#allocation64_spill] sm:$0xff]  ;;  %v2926_v22 = vld [vmem:[#allocation66_spill] sm:$0xff] }
 0x156   :  { %1264 = vmatprep.mubr.bf16.mxu0 %v204_v41  ;;  %1350 = vmatprep.mubr.bf16.mxu1 %v204_v41 }
 0x158   :  { %1235 = vmatpush1.bf16.msra.mxu0 %v2839_v24  ;;  %1321 = vmatpush1.bf16.msra.mxu1 %v2899_v42  ;;  %v2927_v24 = vld [vmem:[#allocation67_spill] sm:$0xff] }
 0x159   :  { %1236 = vmatprep.subr.bf16.mxu0 %v2900_v43  ;;  %1322 = vmatprep.subr.bf16.mxu1 %v2901_v44 }
 0x15c   :  { %1237 = vmatpush1.bf16.msra.mxu0 %v2902_v45  ;;  %1323 = vmatpush1.bf16.msra.mxu1 %v2903_v48 }
 0x15d   :  { %1238 = vmatprep.subr.bf16.mxu0 %v2904_v60  ;;  %1324 = vmatprep.subr.bf16.mxu1 %v2905_v0 }
 0x160   :  { %1239 = vmatpush1.bf16.msra.mxu0 %v2906_v1  ;;  %1325 = vmatpush1.bf16.msra.mxu1 %v2907_v2 }
 0x161   :  { %1240 = vmatprep.subr.bf16.mxu0 %v2908_v3  ;;  %1326 = vmatprep.subr.bf16.mxu1 %v2909_v4 }
 0x164   :  { %1241 = vmatpush1.bf16.msra.mxu0 %v2910_v5  ;;  %1327 = vmatpush1.bf16.msra.mxu1 %v2911_v6 }
 0x165   :  { %1242 = vmatprep.subr.bf16.mxu0 %v2912_v7  ;;  %1328 = vmatprep.subr.bf16.mxu1 %v2913_v8 }
 0x168   :  { %1243 = vmatpush1.bf16.msra.mxu0 %v2914_v9  ;;  %1329 = vmatpush1.bf16.msra.mxu1 %v2915_v10 }
 0x169   :  { %1244 = vmatprep.subr.bf16.mxu0 %v2916_v11  ;;  %1330 = vmatprep.subr.bf16.mxu1 %v2917_v12 }
 0x16c   :  { %1245 = vmatpush1.bf16.msra.mxu0 %v2918_v13  ;;  %1331 = vmatpush1.bf16.msra.mxu1 %v2919_v14 }
 0x16d   :  { %1246 = vmatprep.subr.bf16.mxu0 %v2920_v15  ;;  %1332 = vmatprep.subr.bf16.mxu1 %v2921_v16 }
 0x170   :  { %1247 = vmatpush1.bf16.msra.mxu0 %v2922_v17  ;;  %1333 = vmatpush1.bf16.msra.mxu1 %v2923_v19 }
 0x171   :  { %1248 = vmatprep.subr.bf16.mxu0 %v2924_v20  ;;  %1334 = vmatprep.subr.bf16.mxu1 %v2925_v21 }
 0x174   :  { %1249 = vmatpush1.bf16.msra.mxu0 %v2926_v22  ;;  %1335 = vmatpush1.bf16.msra.mxu1 %v2927_v24 }
 0x175   :  { %1250 = vmatprep.subr.bf16.mxu0 %v2928_v23  ;;  %1336 = vmatprep.subr.bf16.mxu1 %v2929_v51 }
 0x178   :  { %1251 = vmatpush1.bf16.msra.mxu0 %v2930_v61  ;;  %1337 = vmatpush1.bf16.msra.mxu1 %v2931_v50 }
 0x179   :  { %1252 = vmatprep.subr.bf16.mxu0 %v2932_v52  ;;  %1338 = vmatprep.subr.bf16.mxu1 %v2933_v18 }
 0x17c   :  { %1253 = vmatpush1.bf16.msra.mxu0 %v2934_v57  ;;  %1339 = vmatpush1.bf16.msra.mxu1 %v2876_v54  ;;  %v2942_v54 = vld [vmem:[#allocation96_spill] sm:$0xff] }
 0x17d   :  { %1254 = vmatprep.subr.bf16.mxu0 %v2935_v47  ;;  %1340 = vmatprep.subr.bf16.mxu1 %v2878_v55  ;;  %v187_v28 = vunpack.c.l.bf16 %v2942_v54  ;;  %v191_v55 = vunpack.c.h.bf16 %v2942_v54 }
 0x180   :  { %1255 = vmatpush1.bf16.msra.mxu0 %v2936_v49  ;;  %1341 = vmatpush1.bf16.msra.mxu1 %v2937_v56 }
 0x181   :  { %1256 = vmatprep.subr.bf16.mxu0 %v2938_v62  ;;  %1342 = vmatprep.subr.bf16.mxu1 %v2939_v63 }
 0x184   :  { %1257 = vmatpush1.bf16.msra.mxu0 %v2883_v59  ;;  %1343 = vmatpush1.bf16.msra.mxu1 %v2884_v25  ;;  %v195_v59 = vsub.f32 %v2947_v33, %v187_v28  ;;  %v199_v25 = vsub.f32 %v2948_v34, %v191_v55 }
 0x185   :  { %1258 = vmatprep.subr.bf16.mxu0 %v2940_v26  ;;  %1344 = vmatprep.subr.bf16.mxu1 %v2941_v27 }
 0x186   :  { %v203_v38 = vpack.c.bf16 %v199_v25, %v195_v59 }
 0x188   :  { %1259 = vmatpush1.bf16.msra.mxu0 %v2943_v29  ;;  %1345 = vmatpush1.bf16.msra.mxu1 %v2944_v30 }
 0x189   :  { %1260 = vmatprep.subr.bf16.mxu0 %v2945_v31  ;;  %1346 = vmatprep.subr.bf16.mxu1 %v2946_v32 }
 0x18c   :  { %1261 = vmatpush1.bf16.msra.mxu0 %v2949_v35  ;;  %1347 = vmatpush1.bf16.msra.mxu1 %v2261_v58 }
 0x18d   :  { %1262 = vmatprep.subr.bf16.mxu0 %v2950_v36  ;;  %1348 = vmatprep.subr.bf16.mxu1 %v2951_v37 }
 0x190   :  { %1263 = vmatpush1.bf16.msra.mxu0 %v2275_v53  ;;  %1349 = vmatpush1.bf16.msra.mxu1 %v2277_v46 }
 0x193   :  { %1265 = vmatmul.mubr.bf16.vlgmr.msra.gmra.mrb[0].mxu0 %v203_v38  ;;  %1351 = vmatmul.mubr.bf16.vlgmr.msra.gmra.mrb[0].mxu1 %v203_v38 }
 0x266   :  { %v1266_v39 = vpop.f32.mrb[0].mxu0  ;;  %v1352_v40 = vpop.f32.mrb[0].mxu1 }
 0x267   :  { %v1268_v41 = vpop.f32.mrb[1].mxu0  ;;  %v1354_v42 = vpop.f32.mrb[1].mxu1 }
 0x268   :  { %v1369_v43 = vmax.f32 %v1266_v39, %v1268_v41  ;;  %v1270_v44 = vpop.f32.mrb[2].mxu0  ;;  %v1356_v45 = vpop.f32.mrb[2].mxu1 }
 0x269   :  { %v1272_v48 = vpop.f32.mrb[3].mxu0  ;;  %v1358_v58 = vpop.f32.mrb[3].mxu1 }
 0x26a   :  { %v1371_v60 = vmax.f32 %v1369_v43, %v1352_v40  ;;  %v1370_v0 = vmax.f32 %v1270_v44, %v1272_v48 }
 0x26c   :  { %v1373_v1 = vmax.f32 %v1371_v60, %v1354_v42  ;;  %v1372_v2 = vmax.f32 %v1370_v0, %v1356_v45 }
 0x26e   :  { %1375 = vst [vmem:[%s2551_s2] sm:$0xff] %v1373_v1  ;;  %v1374_v46 = vmax.f32 %v1372_v2, %v1358_v58 }
 0x270   :  { %1376 = vst [vmem:[%s2551_s2 + $0x8] sm:$0xff] %v1374_v46 }
 0x271   :  { %1381 = vsyncpa [#allocation3], 1 }

</bundles_post_ra>
